<compile_context>
chip_gen: v5e
topology: v5e:2x2
jax: 0.10.0
libtpu: 0.0.40
codegen_flags: <defaults>
</compile_context>

<pallas_src>
import math
import jax
import jax.numpy as jnp
from jax.experimental import pallas as pl
from jax.experimental.pallas import tpu as pltpu

# ----- synthetic hyperparameters (small) -----
WORD_EMB = 32          # word_embedding_dim
CHAR_EMB = 16          # char_embedding_dim
HIDDEN = 32            # hidden_dim
NUM_KERNELS = 32       # num_kernels
KERNEL_W = 3           # kernel_width
VOCAB = 50             # vocab_size
ALPHABET = 26          # alphabet_size
SEQ_LEN = 8            # words per sentence
CHARS = 6              # chars per word (fixed length for this synthetic input)
PAD = math.ceil((KERNEL_W - 1) / 2)
L_PADDED = CHARS + 2 * PAD               # 8
L_OUT = L_PADDED - KERNEL_W + 1          # 6 (== PyTorch Conv1d output length)
D_IN = WORD_EMB + NUM_KERNELS            # LSTM input size (pos_vector_size = 0)

ALPHABET_PAD = 32                        # one-hot width for char indices
VOCAB_PAD = 64                           # one-hot width for word indices
CHAR_OH = CHARS * ALPHABET_PAD           # 192
CONV_COLS = L_OUT * NUM_KERNELS          # 192
GATES = 4 * HIDDEN                       # 128

B = 16                                   # sentences per forward call (batched extension)
B_TILE = 8                               # sentences per grid step
TILE_ROWS = B_TILE * SEQ_LEN             # 64 rows per tile (time-major: row = t*B_TILE + b)


# ---------------- fused Pallas kernel: one-hot gathers + conv + LSTM ----------------
def fused_tagger_kernel(char_idx_ref, word_idx_ref,            # int32 index blocks (VMEM)
                        conv_gather_ref, conv_bias_ref,        # fused char-emb x conv table
                        word_proj_ref, wih_char_ref,           # folded input projection
                        whh_ref, bias_ref,                     # LSTM hidden weights / bias
                        o_ref):                                # (TILE_ROWS, HIDDEN) output
    f32 = jnp.float32
    bf16 = jnp.bfloat16

    # ---- 1. char path: one-hot(chars) @ conv_gather == gather + pad + im2col + Conv1d ----
    alpha = jax.lax.broadcasted_iota(jnp.int32, (TILE_ROWS, CHAR_OH), 1) & (ALPHABET_PAD - 1)
    onehot_c = (char_idx_ref[...] == alpha).astype(bf16)                  # (64, 192)
    conv_all = jnp.dot(onehot_c, conv_gather_ref[...],
                       preferred_element_type=f32)                        # (64, 192)
    conv_all = jnp.tanh(conv_all + conv_bias_ref[...])
    # max over the L_OUT=6 time positions (32-lane column blocks)
    feat = conv_all[:, 0:NUM_KERNELS]
    for l in range(1, L_OUT):
        feat = jnp.maximum(feat, conv_all[:, l * NUM_KERNELS:(l + 1) * NUM_KERNELS])

    # ---- 2. LSTM input projection (word-emb gather folded into word_proj at init) ----
    vid = jax.lax.broadcasted_iota(jnp.int32, (TILE_ROWS, VOCAB_PAD), 1)
    onehot_w = (word_idx_ref[...] == vid).astype(bf16)                    # (64, 64)
    gx = (jnp.dot(onehot_w, word_proj_ref[...], preferred_element_type=f32)
          + jnp.dot(feat.astype(bf16), wih_char_ref[...], preferred_element_type=f32)
          + bias_ref[...])                                                # (64, 128) i,f,g,o

    # ---- 3. time recurrence: one (B_TILE,32)@(32,128) dot per step ----
    whh = whh_ref[...]                                                    # (32, 128) bf16
    h = jnp.zeros((B_TILE, HIDDEN), f32)
    c = jnp.zeros((B_TILE, HIDDEN), f32)
    hs = []
    for t in range(SEQ_LEN):
        g = gx[t * B_TILE:(t + 1) * B_TILE, :] + jnp.dot(
            h.astype(bf16), whh, preferred_element_type=f32)              # (B_TILE, 128)
        gi = g[:, 0:HIDDEN]
        gf = g[:, HIDDEN:2 * HIDDEN]
        gg = g[:, 2 * HIDDEN:3 * HIDDEN]
        go = g[:, 3 * HIDDEN:4 * HIDDEN]
        c = jax.nn.sigmoid(gf) * c + jax.nn.sigmoid(gi) * jnp.tanh(gg)
        h = jax.nn.sigmoid(go) * jnp.tanh(c)
        hs.append(h)

    # ---- 4. single bulk store (rows are time-major: row = t*B_TILE + b) ----
    o_ref[...] = jnp.concatenate(hs, axis=0)                              # (64, 32)


def fused_tagger(char_rep, word_col, p):
    num_tiles = char_rep.shape[0]
    grid_spec = pltpu.PrefetchScalarGridSpec(
        num_scalar_prefetch=0,
        grid=(num_tiles,),
        in_specs=[
            pl.BlockSpec((None, TILE_ROWS, CHAR_OH), lambda i: (i, 0, 0)),   # char idx (rep)
            pl.BlockSpec((None, TILE_ROWS, 1), lambda i: (i, 0, 0)),         # word idx
            pl.BlockSpec((CHAR_OH, CONV_COLS), lambda i: (0, 0)),            # conv_gather
            pl.BlockSpec((1, CONV_COLS), lambda i: (0, 0)),                  # conv bias band
            pl.BlockSpec((VOCAB_PAD, GATES), lambda i: (0, 0)),              # word_proj
            pl.BlockSpec((NUM_KERNELS, GATES), lambda i: (0, 0)),            # W_ih (char part)
            pl.BlockSpec((HIDDEN, GATES), lambda i: (0, 0)),                 # W_hh^T
            pl.BlockSpec((1, GATES), lambda i: (0, 0)),                      # b_ih + b_hh
        ],
        out_specs=pl.BlockSpec((None, TILE_ROWS, HIDDEN), lambda i: (i, 0, 0)),
    )
    return pl.pallas_call(
        fused_tagger_kernel,
        out_shape=jax.ShapeDtypeStruct((num_tiles, TILE_ROWS, HIDDEN), jnp.float32),
        grid_spec=grid_spec,
        compiler_params=pltpu.CompilerParams(dimension_semantics=("parallel",)),
    )(char_rep, word_col, p['conv_gather'], p['conv_bias_band'],
      p['word_proj'], p['w_ih_char'], p['w_hh_t'], p['bias'])


# ---------------- parameter init (PyTorch shapes) + one-time layout/fusion prep ----------------
def init_params(key):
    ks = jax.random.split(key, 8)
    u = lambda k, shape, s: jax.random.uniform(k, shape, jnp.float32, -s, s)
    conv_scale = 1.0 / math.sqrt(CHAR_EMB * KERNEL_W)
    lstm_scale = 1.0 / math.sqrt(HIDDEN)
    raw = {
        'char_emb': jax.random.normal(ks[0], (ALPHABET, CHAR_EMB), jnp.float32),
        'word_emb': jax.random.normal(ks[1], (VOCAB, WORD_EMB), jnp.float32),
        'conv_w': u(ks[2], (NUM_KERNELS, CHAR_EMB, KERNEL_W), conv_scale),   # Conv1d weight
        'conv_b': u(ks[3], (NUM_KERNELS,), conv_scale),                      # Conv1d bias
        'w_ih': u(ks[4], (4 * HIDDEN, D_IN), lstm_scale),                    # LSTM weight_ih_l0
        'w_hh': u(ks[5], (4 * HIDDEN, HIDDEN), lstm_scale),                  # LSTM weight_hh_l0
        'b_ih': u(ks[6], (4 * HIDDEN,), lstm_scale),
        'b_hh': u(ks[7], (4 * HIDDEN,), lstm_scale),
    }
    return raw, prep_kernel_params(raw)


def prep_kernel_params(raw):
    # (N, C, K) -> (K, C, N) -> (K*C, N): row m = k*C + c
    conv_w_flat = jnp.transpose(raw['conv_w'], (2, 1, 0)).reshape(
        KERNEL_W * CHAR_EMB, NUM_KERNELS)
    # E_place: one-hot-char-row -> zero-padded im2col position
    e_place = jnp.zeros((CHAR_OH, L_PADDED * CHAR_EMB), jnp.float32)
    for j in range(CHARS):
        e_place = e_place.at[j * ALPHABET_PAD:j * ALPHABET_PAD + ALPHABET,
                             (PAD + j) * CHAR_EMB:(PAD + j + 1) * CHAR_EMB].set(raw['char_emb'])
    # banded conv weight: column block l = conv_w_flat shifted down by l*CHAR_EMB rows
    w_band = jnp.zeros((L_PADDED * CHAR_EMB, CONV_COLS), jnp.float32)
    for l in range(L_OUT):
        w_band = w_band.at[l * CHAR_EMB:l * CHAR_EMB + KERNEL_W * CHAR_EMB,
                           l * NUM_KERNELS:(l + 1) * NUM_KERNELS].set(conv_w_flat)
    # fused gather+pad+conv table (computed in f32, stored bf16 for the MXU)
    conv_gather = (e_place @ w_band).astype(jnp.bfloat16)                  # (192, 192)
    conv_bias_band = jnp.tile(raw['conv_b'], L_OUT).reshape(1, CONV_COLS)  # f32

    w_ih_t = raw['w_ih'].T                                                 # (D_IN, 4H)
    word_proj = jnp.zeros((VOCAB_PAD, GATES), jnp.float32).at[:VOCAB].set(
        raw['word_emb'] @ w_ih_t[:WORD_EMB, :]).astype(jnp.bfloat16)       # (64, 128)
    return {
        'conv_gather': conv_gather,
        'conv_bias_band': conv_bias_band,
        'word_proj': word_proj,
        'w_ih_char': w_ih_t[WORD_EMB:, :].astype(jnp.bfloat16),            # (32, 128)
        'w_hh_t': raw['w_hh'].T.astype(jnp.bfloat16),                      # (32, 128)
        'bias': (raw['b_ih'] + raw['b_hh']).reshape(1, GATES),             # f32
    }


# ---------------- forward wrapper (batch of sentences; B_TILE=1 tile == original module) ----------------
@jax.jit
def char_cnn_tagger_forward(kparams, word_idxs, char_idxs):
    batch = word_idxs.shape[0]
    assert batch % B_TILE == 0
    nt = batch // B_TILE
    # rows within a tile are time-major (row = t*B_TILE + b) so per-step slices are 8-aligned
    ci = char_idxs.astype(jnp.int32).reshape(nt, B_TILE, SEQ_LEN, CHARS)
    ci = ci.transpose(0, 2, 1, 3).reshape(nt, TILE_ROWS, CHARS)
    ci_rep = jnp.repeat(ci, ALPHABET_PAD, axis=-1)                         # (nt, 64, 192)
    wi = word_idxs.astype(jnp.int32).reshape(nt, B_TILE, SEQ_LEN)
    wi = wi.transpose(0, 2, 1).reshape(nt, TILE_ROWS, 1)

    out = fused_tagger(ci_rep, wi, kparams)                                # (nt, 64, H)
    out = out.reshape(nt, SEQ_LEN, B_TILE, HIDDEN).transpose(0, 2, 1, 3)
    # TODO(synk): nn.Dropout is identity at inference; training-mode dropout not modeled.
    return out.reshape(batch, SEQ_LEN, HIDDEN)                             # (B, seq, hidden)


# ---------------- pure-JAX reference (f32, PyTorch-shaped params) ----------------
def reference_forward(raw, word_idxs, char_idxs):
    batch = word_idxs.shape[0]
    ce = raw['char_emb'][char_idxs]                                        # (B,S,CHARS,C)
    ce = jnp.pad(ce, ((0, 0), (0, 0), (PAD, PAD), (0, 0)))                 # zero pad like Conv1d
    windows = jnp.stack([ce[:, :, l:l + KERNEL_W, :] for l in range(L_OUT)], axis=2)
    conv = jnp.einsum('bslkc,nck->bsln', windows, raw['conv_w']) + raw['conv_b']
    feat = jnp.max(jnp.tanh(conv), axis=2)                                 # (B,S,N)
    we = raw['word_emb'][word_idxs]                                        # (B,S,WE)
    x = jnp.concatenate([we, feat], axis=-1)                               # (B,S,D_IN)
    w_ih, w_hh = raw['w_ih'], raw['w_hh']
    bias = raw['b_ih'] + raw['b_hh']

    def step(carry, xt):
        h, c = carry
        g = xt @ w_ih.T + h @ w_hh.T + bias
        gi, gf, gg, go = jnp.split(g, 4, axis=-1)
        c = jax.nn.sigmoid(gf) * c + jax.nn.sigmoid(gi) * jnp.tanh(gg)
        h = jax.nn.sigmoid(go) * jnp.tanh(c)
        return (h, c), h

    init = (jnp.zeros((batch, HIDDEN), jnp.float32), jnp.zeros((batch, HIDDEN), jnp.float32))
    _, hs = jax.lax.scan(step, init, x.transpose(1, 0, 2))
    return hs.transpose(1, 0, 2)                                           # (B,S,H)


if __name__ == "__main__":
    key = jax.random.PRNGKey(0)
    pkey, wkey, ckey = jax.random.split(key, 3)
    raw_params, kernel_params = init_params(pkey)
    word_idxs = jax.random.randint(wkey, (B, SEQ_LEN), 0, VOCAB)
    char_idxs = jax.random.randint(ckey, (B, SEQ_LEN, CHARS), 0, ALPHABET)

    out = char_cnn_tagger_forward(kernel_params, word_idxs, char_idxs)
    out = jax.block_until_ready(out)

    ref = reference_forward(raw_params, word_idxs, char_idxs)
    err = float(jnp.max(jnp.abs(out - ref)))

    assert out.shape == (B, SEQ_LEN, HIDDEN)
    assert bool(jnp.all(jnp.isfinite(out)))
    assert err < 5e-2, f"mismatch vs reference: max abs err = {err}"
    print("KERNEL_OK")
</pallas_src>

<mosaic_0001>
module attributes {stable_mosaic.version = 11 : i64} {
  func.func @fused_tagger_kernel(%arg0: i32, %arg1: memref<1x64x192xi32, #tpu.memory_space<vmem>>, %arg2: memref<1x64x1xi32, #tpu.memory_space<vmem>>, %arg3: memref<192x192xbf16, #tpu.memory_space<vmem>>, %arg4: memref<1x192xf32, #tpu.memory_space<vmem>>, %arg5: memref<64x128xbf16, #tpu.memory_space<vmem>>, %arg6: memref<32x128xbf16, #tpu.memory_space<vmem>>, %arg7: memref<32x128xbf16, #tpu.memory_space<vmem>>, %arg8: memref<1x128xf32, #tpu.memory_space<vmem>>, %arg9: memref<1x64x32xf32, #tpu.memory_space<vmem>>) attributes {dimension_semantics = [#tpu.dimension_semantics<parallel>], iteration_bounds = array<i64: 2>, scalar_prefetch = 0 : i64, scratch_operands = 0 : i64, tpu.core_type = #tpu.core_type<tc>, window_params = [{transform_indices = @transform_0, window_bounds = array<i64: 1, 64, 192>}, {transform_indices = @transform_1, window_bounds = array<i64: 1, 64, 1>}, {pipeline_mode = #tpu.pipeline_mode<synchronous>, transform_indices = @transform_2, window_bounds = array<i64: 192, 192>}, {pipeline_mode = #tpu.pipeline_mode<synchronous>, transform_indices = @transform_3, window_bounds = array<i64: 1, 192>}, {pipeline_mode = #tpu.pipeline_mode<synchronous>, transform_indices = @transform_4, window_bounds = array<i64: 64, 128>}, {pipeline_mode = #tpu.pipeline_mode<synchronous>, transform_indices = @transform_5, window_bounds = array<i64: 32, 128>}, {pipeline_mode = #tpu.pipeline_mode<synchronous>, transform_indices = @transform_6, window_bounds = array<i64: 32, 128>}, {pipeline_mode = #tpu.pipeline_mode<synchronous>, transform_indices = @transform_7, window_bounds = array<i64: 1, 128>}, {transform_indices = @transform_8, window_bounds = array<i64: 1, 64, 32>}]} {
    %0 = tpu.iota {dimensions = array<i32: 1>} : vector<64x192xi32>
    %c31_i32 = arith.constant 31 : i32
    %1 = vector.broadcast %c31_i32 : i32 to vector<64x192xi32>
    %2 = arith.andi %0, %1 : vector<64x192xi32>
    %c0 = arith.constant 0 : index
    %c0_0 = arith.constant 0 : index
    %c0_1 = arith.constant 0 : index
    %3 = vector.load %arg1[%c0, %c0_0, %c0_1] : memref<1x64x192xi32, #tpu.memory_space<vmem>>, vector<1x64x192xi32>
    %4 = vector.shape_cast %3 : vector<1x64x192xi32> to vector<64x192xi32>
    %5 = arith.cmpi eq, %4, %2 : vector<64x192xi32>
    %6 = arith.extui %5 : vector<64x192xi1> to vector<64x192xi32>
    %7 = arith.sitofp %6 : vector<64x192xi32> to vector<64x192xf32>
    %8 = arith.truncf %7 : vector<64x192xf32> to vector<64x192xbf16>
    %c0_2 = arith.constant 0 : index
    %c0_3 = arith.constant 0 : index
    %9 = vector.load %arg3[%c0_2, %c0_3] : memref<192x192xbf16, #tpu.memory_space<vmem>>, vector<192x192xbf16>
    %cst = arith.constant dense<0.000000e+00> : vector<64x192xf32>
    %10 = tpu.matmul %8, %9, %cst {dimension_numbers = #tpu.dot_dimension_numbers<[1], [0], [0], [1], [0, 0, 1, 1], [], []>} : vector<64x192xbf16>, vector<192x192xbf16>, vector<64x192xf32> -> vector<64x192xf32>
    %c0_4 = arith.constant 0 : index
    %c0_5 = arith.constant 0 : index
    %11 = vector.load %arg4[%c0_4, %c0_5] : memref<1x192xf32, #tpu.memory_space<vmem>>, vector<1x192xf32>
    %12 = vector.broadcast %11 : vector<1x192xf32> to vector<64x192xf32>
    %13 = arith.addf %10, %12 : vector<64x192xf32>
    %14 = math.tanh %13 : vector<64x192xf32>
    %15 = vector.extract_strided_slice %14 {offsets = [0, 0], sizes = [64, 32], strides = [1, 1]} : vector<64x192xf32> to vector<64x32xf32>
    %16 = vector.extract_strided_slice %14 {offsets = [0, 32], sizes = [64, 32], strides = [1, 1]} : vector<64x192xf32> to vector<64x32xf32>
    %17 = arith.maximumf %15, %16 : vector<64x32xf32>
    %18 = vector.extract_strided_slice %14 {offsets = [0, 64], sizes = [64, 32], strides = [1, 1]} : vector<64x192xf32> to vector<64x32xf32>
    %19 = arith.maximumf %17, %18 : vector<64x32xf32>
    %20 = vector.extract_strided_slice %14 {offsets = [0, 96], sizes = [64, 32], strides = [1, 1]} : vector<64x192xf32> to vector<64x32xf32>
    %21 = arith.maximumf %19, %20 : vector<64x32xf32>
    %22 = vector.extract_strided_slice %14 {offsets = [0, 128], sizes = [64, 32], strides = [1, 1]} : vector<64x192xf32> to vector<64x32xf32>
    %23 = arith.maximumf %21, %22 : vector<64x32xf32>
    %24 = vector.extract_strided_slice %14 {offsets = [0, 160], sizes = [64, 32], strides = [1, 1]} : vector<64x192xf32> to vector<64x32xf32>
    %25 = arith.maximumf %23, %24 : vector<64x32xf32>
    %26 = tpu.iota {dimensions = array<i32: 1>} : vector<64x64xi32>
    %c0_6 = arith.constant 0 : index
    %c0_7 = arith.constant 0 : index
    %c0_8 = arith.constant 0 : index
    %27 = vector.load %arg2[%c0_6, %c0_7, %c0_8] : memref<1x64x1xi32, #tpu.memory_space<vmem>>, vector<1x64x1xi32>
    %28 = vector.shape_cast %27 : vector<1x64x1xi32> to vector<64x1xi32>
    %29 = vector.broadcast %28 : vector<64x1xi32> to vector<64x64xi32>
    %30 = arith.cmpi eq, %29, %26 : vector<64x64xi32>
    %31 = arith.extui %30 : vector<64x64xi1> to vector<64x64xi32>
    %32 = arith.sitofp %31 : vector<64x64xi32> to vector<64x64xf32>
    %33 = arith.truncf %32 : vector<64x64xf32> to vector<64x64xbf16>
    %c0_9 = arith.constant 0 : index
    %c0_10 = arith.constant 0 : index
    %34 = vector.load %arg5[%c0_9, %c0_10] : memref<64x128xbf16, #tpu.memory_space<vmem>>, vector<64x128xbf16>
    %cst_11 = arith.constant dense<0.000000e+00> : vector<64x128xf32>
    %35 = tpu.matmul %33, %34, %cst_11 {dimension_numbers = #tpu.dot_dimension_numbers<[1], [0], [0], [1], [0, 0, 1, 1], [], []>} : vector<64x64xbf16>, vector<64x128xbf16>, vector<64x128xf32> -> vector<64x128xf32>
    %36 = arith.truncf %25 : vector<64x32xf32> to vector<64x32xbf16>
    %c0_12 = arith.constant 0 : index
    %c0_13 = arith.constant 0 : index
    %37 = vector.load %arg6[%c0_12, %c0_13] : memref<32x128xbf16, #tpu.memory_space<vmem>>, vector<32x128xbf16>
    %cst_14 = arith.constant dense<0.000000e+00> : vector<64x128xf32>
    %38 = tpu.matmul %36, %37, %cst_14 {dimension_numbers = #tpu.dot_dimension_numbers<[1], [0], [0], [1], [0, 0, 1, 1], [], []>} : vector<64x32xbf16>, vector<32x128xbf16>, vector<64x128xf32> -> vector<64x128xf32>
    %39 = arith.addf %35, %38 : vector<64x128xf32>
    %c0_15 = arith.constant 0 : index
    %c0_16 = arith.constant 0 : index
    %40 = vector.load %arg8[%c0_15, %c0_16] : memref<1x128xf32, #tpu.memory_space<vmem>>, vector<1x128xf32>
    %41 = vector.broadcast %40 : vector<1x128xf32> to vector<64x128xf32>
    %42 = arith.addf %39, %41 : vector<64x128xf32>
    %c0_17 = arith.constant 0 : index
    %c0_18 = arith.constant 0 : index
    %43 = vector.load %arg7[%c0_17, %c0_18] : memref<32x128xbf16, #tpu.memory_space<vmem>>, vector<32x128xbf16>
    %cst_19 = arith.constant 0.000000e+00 : f32
    %44 = vector.broadcast %cst_19 : f32 to vector<8x32xf32>
    %cst_20 = arith.constant 0.000000e+00 : f32
    %45 = vector.broadcast %cst_20 : f32 to vector<8x32xf32>
    %46 = vector.extract_strided_slice %42 {offsets = [0, 0], sizes = [8, 128], strides = [1, 1]} : vector<64x128xf32> to vector<8x128xf32>
    %47 = arith.truncf %44 : vector<8x32xf32> to vector<8x32xbf16>
    %cst_21 = arith.constant dense<0.000000e+00> : vector<8x128xf32>
    %48 = tpu.matmul %47, %43, %cst_21 {dimension_numbers = #tpu.dot_dimension_numbers<[1], [0], [0], [1], [0, 0, 1, 1], [], []>} : vector<8x32xbf16>, vector<32x128xbf16>, vector<8x128xf32> -> vector<8x128xf32>
    %49 = arith.addf %46, %48 : vector<8x128xf32>
    %50 = vector.extract_strided_slice %49 {offsets = [0, 0], sizes = [8, 32], strides = [1, 1]} : vector<8x128xf32> to vector<8x32xf32>
    %51 = vector.extract_strided_slice %49 {offsets = [0, 32], sizes = [8, 32], strides = [1, 1]} : vector<8x128xf32> to vector<8x32xf32>
    %52 = vector.extract_strided_slice %49 {offsets = [0, 64], sizes = [8, 32], strides = [1, 1]} : vector<8x128xf32> to vector<8x32xf32>
    %53 = vector.extract_strided_slice %49 {offsets = [0, 96], sizes = [8, 32], strides = [1, 1]} : vector<8x128xf32> to vector<8x32xf32>
    %54 = arith.negf %51 : vector<8x32xf32>
    %55 = math.exp %54 : vector<8x32xf32>
    %cst_22 = arith.constant 1.000000e+00 : f32
    %56 = vector.broadcast %cst_22 : f32 to vector<8x32xf32>
    %57 = arith.addf %56, %55 : vector<8x32xf32>
    %58 = arith.divf %56, %57 : vector<8x32xf32>
    %59 = arith.mulf %58, %45 : vector<8x32xf32>
    %60 = arith.negf %50 : vector<8x32xf32>
    %61 = math.exp %60 : vector<8x32xf32>
    %cst_23 = arith.constant 1.000000e+00 : f32
    %62 = vector.broadcast %cst_23 : f32 to vector<8x32xf32>
    %63 = arith.addf %62, %61 : vector<8x32xf32>
    %64 = arith.divf %62, %63 : vector<8x32xf32>
    %65 = math.tanh %52 : vector<8x32xf32>
    %66 = arith.mulf %64, %65 : vector<8x32xf32>
    %67 = arith.addf %59, %66 : vector<8x32xf32>
    %68 = arith.negf %53 : vector<8x32xf32>
    %69 = math.exp %68 : vector<8x32xf32>
    %cst_24 = arith.constant 1.000000e+00 : f32
    %70 = vector.broadcast %cst_24 : f32 to vector<8x32xf32>
    %71 = arith.addf %70, %69 : vector<8x32xf32>
    %72 = arith.divf %70, %71 : vector<8x32xf32>
    %73 = math.tanh %67 : vector<8x32xf32>
    %74 = arith.mulf %72, %73 : vector<8x32xf32>
    %75 = vector.extract_strided_slice %42 {offsets = [8, 0], sizes = [8, 128], strides = [1, 1]} : vector<64x128xf32> to vector<8x128xf32>
    %76 = arith.truncf %74 : vector<8x32xf32> to vector<8x32xbf16>
    %cst_25 = arith.constant dense<0.000000e+00> : vector<8x128xf32>
    %77 = tpu.matmul %76, %43, %cst_25 {dimension_numbers = #tpu.dot_dimension_numbers<[1], [0], [0], [1], [0, 0, 1, 1], [], []>} : vector<8x32xbf16>, vector<32x128xbf16>, vector<8x128xf32> -> vector<8x128xf32>
    %78 = arith.addf %75, %77 : vector<8x128xf32>
    %79 = vector.extract_strided_slice %78 {offsets = [0, 0], sizes = [8, 32], strides = [1, 1]} : vector<8x128xf32> to vector<8x32xf32>
    %80 = vector.extract_strided_slice %78 {offsets = [0, 32], sizes = [8, 32], strides = [1, 1]} : vector<8x128xf32> to vector<8x32xf32>
    %81 = vector.extract_strided_slice %78 {offsets = [0, 64], sizes = [8, 32], strides = [1, 1]} : vector<8x128xf32> to vector<8x32xf32>
    %82 = vector.extract_strided_slice %78 {offsets = [0, 96], sizes = [8, 32], strides = [1, 1]} : vector<8x128xf32> to vector<8x32xf32>
    %83 = arith.negf %80 : vector<8x32xf32>
    %84 = math.exp %83 : vector<8x32xf32>
    %cst_26 = arith.constant 1.000000e+00 : f32
    %85 = vector.broadcast %cst_26 : f32 to vector<8x32xf32>
    %86 = arith.addf %85, %84 : vector<8x32xf32>
    %87 = arith.divf %85, %86 : vector<8x32xf32>
    %88 = arith.mulf %87, %67 : vector<8x32xf32>
    %89 = arith.negf %79 : vector<8x32xf32>
    %90 = math.exp %89 : vector<8x32xf32>
    %cst_27 = arith.constant 1.000000e+00 : f32
    %91 = vector.broadcast %cst_27 : f32 to vector<8x32xf32>
    %92 = arith.addf %91, %90 : vector<8x32xf32>
    %93 = arith.divf %91, %92 : vector<8x32xf32>
    %94 = math.tanh %81 : vector<8x32xf32>
    %95 = arith.mulf %93, %94 : vector<8x32xf32>
    %96 = arith.addf %88, %95 : vector<8x32xf32>
    %97 = arith.negf %82 : vector<8x32xf32>
    %98 = math.exp %97 : vector<8x32xf32>
    %cst_28 = arith.constant 1.000000e+00 : f32
    %99 = vector.broadcast %cst_28 : f32 to vector<8x32xf32>
    %100 = arith.addf %99, %98 : vector<8x32xf32>
    %101 = arith.divf %99, %100 : vector<8x32xf32>
    %102 = math.tanh %96 : vector<8x32xf32>
    %103 = arith.mulf %101, %102 : vector<8x32xf32>
    %104 = vector.extract_strided_slice %42 {offsets = [16, 0], sizes = [8, 128], strides = [1, 1]} : vector<64x128xf32> to vector<8x128xf32>
    %105 = arith.truncf %103 : vector<8x32xf32> to vector<8x32xbf16>
    %cst_29 = arith.constant dense<0.000000e+00> : vector<8x128xf32>
    %106 = tpu.matmul %105, %43, %cst_29 {dimension_numbers = #tpu.dot_dimension_numbers<[1], [0], [0], [1], [0, 0, 1, 1], [], []>} : vector<8x32xbf16>, vector<32x128xbf16>, vector<8x128xf32> -> vector<8x128xf32>
    %107 = arith.addf %104, %106 : vector<8x128xf32>
    %108 = vector.extract_strided_slice %107 {offsets = [0, 0], sizes = [8, 32], strides = [1, 1]} : vector<8x128xf32> to vector<8x32xf32>
    %109 = vector.extract_strided_slice %107 {offsets = [0, 32], sizes = [8, 32], strides = [1, 1]} : vector<8x128xf32> to vector<8x32xf32>
    %110 = vector.extract_strided_slice %107 {offsets = [0, 64], sizes = [8, 32], strides = [1, 1]} : vector<8x128xf32> to vector<8x32xf32>
    %111 = vector.extract_strided_slice %107 {offsets = [0, 96], sizes = [8, 32], strides = [1, 1]} : vector<8x128xf32> to vector<8x32xf32>
    %112 = arith.negf %109 : vector<8x32xf32>
    %113 = math.exp %112 : vector<8x32xf32>
    %cst_30 = arith.constant 1.000000e+00 : f32
    %114 = vector.broadcast %cst_30 : f32 to vector<8x32xf32>
    %115 = arith.addf %114, %113 : vector<8x32xf32>
    %116 = arith.divf %114, %115 : vector<8x32xf32>
    %117 = arith.mulf %116, %96 : vector<8x32xf32>
    %118 = arith.negf %108 : vector<8x32xf32>
    %119 = math.exp %118 : vector<8x32xf32>
    %cst_31 = arith.constant 1.000000e+00 : f32
    %120 = vector.broadcast %cst_31 : f32 to vector<8x32xf32>
    %121 = arith.addf %120, %119 : vector<8x32xf32>
    %122 = arith.divf %120, %121 : vector<8x32xf32>
    %123 = math.tanh %110 : vector<8x32xf32>
    %124 = arith.mulf %122, %123 : vector<8x32xf32>
    %125 = arith.addf %117, %124 : vector<8x32xf32>
    %126 = arith.negf %111 : vector<8x32xf32>
    %127 = math.exp %126 : vector<8x32xf32>
    %cst_32 = arith.constant 1.000000e+00 : f32
    %128 = vector.broadcast %cst_32 : f32 to vector<8x32xf32>
    %129 = arith.addf %128, %127 : vector<8x32xf32>
    %130 = arith.divf %128, %129 : vector<8x32xf32>
    %131 = math.tanh %125 : vector<8x32xf32>
    %132 = arith.mulf %130, %131 : vector<8x32xf32>
    %133 = vector.extract_strided_slice %42 {offsets = [24, 0], sizes = [8, 128], strides = [1, 1]} : vector<64x128xf32> to vector<8x128xf32>
    %134 = arith.truncf %132 : vector<8x32xf32> to vector<8x32xbf16>
    %cst_33 = arith.constant dense<0.000000e+00> : vector<8x128xf32>
    %135 = tpu.matmul %134, %43, %cst_33 {dimension_numbers = #tpu.dot_dimension_numbers<[1], [0], [0], [1], [0, 0, 1, 1], [], []>} : vector<8x32xbf16>, vector<32x128xbf16>, vector<8x128xf32> -> vector<8x128xf32>
    %136 = arith.addf %133, %135 : vector<8x128xf32>
    %137 = vector.extract_strided_slice %136 {offsets = [0, 0], sizes = [8, 32], strides = [1, 1]} : vector<8x128xf32> to vector<8x32xf32>
    %138 = vector.extract_strided_slice %136 {offsets = [0, 32], sizes = [8, 32], strides = [1, 1]} : vector<8x128xf32> to vector<8x32xf32>
    %139 = vector.extract_strided_slice %136 {offsets = [0, 64], sizes = [8, 32], strides = [1, 1]} : vector<8x128xf32> to vector<8x32xf32>
    %140 = vector.extract_strided_slice %136 {offsets = [0, 96], sizes = [8, 32], strides = [1, 1]} : vector<8x128xf32> to vector<8x32xf32>
    %141 = arith.negf %138 : vector<8x32xf32>
    %142 = math.exp %141 : vector<8x32xf32>
    %cst_34 = arith.constant 1.000000e+00 : f32
    %143 = vector.broadcast %cst_34 : f32 to vector<8x32xf32>
    %144 = arith.addf %143, %142 : vector<8x32xf32>
    %145 = arith.divf %143, %144 : vector<8x32xf32>
    %146 = arith.mulf %145, %125 : vector<8x32xf32>
    %147 = arith.negf %137 : vector<8x32xf32>
    %148 = math.exp %147 : vector<8x32xf32>
    %cst_35 = arith.constant 1.000000e+00 : f32
    %149 = vector.broadcast %cst_35 : f32 to vector<8x32xf32>
    %150 = arith.addf %149, %148 : vector<8x32xf32>
    %151 = arith.divf %149, %150 : vector<8x32xf32>
    %152 = math.tanh %139 : vector<8x32xf32>
    %153 = arith.mulf %151, %152 : vector<8x32xf32>
    %154 = arith.addf %146, %153 : vector<8x32xf32>
    %155 = arith.negf %140 : vector<8x32xf32>
    %156 = math.exp %155 : vector<8x32xf32>
    %cst_36 = arith.constant 1.000000e+00 : f32
    %157 = vector.broadcast %cst_36 : f32 to vector<8x32xf32>
    %158 = arith.addf %157, %156 : vector<8x32xf32>
    %159 = arith.divf %157, %158 : vector<8x32xf32>
    %160 = math.tanh %154 : vector<8x32xf32>
    %161 = arith.mulf %159, %160 : vector<8x32xf32>
    %162 = vector.extract_strided_slice %42 {offsets = [32, 0], sizes = [8, 128], strides = [1, 1]} : vector<64x128xf32> to vector<8x128xf32>
    %163 = arith.truncf %161 : vector<8x32xf32> to vector<8x32xbf16>
    %cst_37 = arith.constant dense<0.000000e+00> : vector<8x128xf32>
    %164 = tpu.matmul %163, %43, %cst_37 {dimension_numbers = #tpu.dot_dimension_numbers<[1], [0], [0], [1], [0, 0, 1, 1], [], []>} : vector<8x32xbf16>, vector<32x128xbf16>, vector<8x128xf32> -> vector<8x128xf32>
    %165 = arith.addf %162, %164 : vector<8x128xf32>
    %166 = vector.extract_strided_slice %165 {offsets = [0, 0], sizes = [8, 32], strides = [1, 1]} : vector<8x128xf32> to vector<8x32xf32>
    %167 = vector.extract_strided_slice %165 {offsets = [0, 32], sizes = [8, 32], strides = [1, 1]} : vector<8x128xf32> to vector<8x32xf32>
    %168 = vector.extract_strided_slice %165 {offsets = [0, 64], sizes = [8, 32], strides = [1, 1]} : vector<8x128xf32> to vector<8x32xf32>
    %169 = vector.extract_strided_slice %165 {offsets = [0, 96], sizes = [8, 32], strides = [1, 1]} : vector<8x128xf32> to vector<8x32xf32>
    %170 = arith.negf %167 : vector<8x32xf32>
    %171 = math.exp %170 : vector<8x32xf32>
    %cst_38 = arith.constant 1.000000e+00 : f32
    %172 = vector.broadcast %cst_38 : f32 to vector<8x32xf32>
    %173 = arith.addf %172, %171 : vector<8x32xf32>
    %174 = arith.divf %172, %173 : vector<8x32xf32>
    %175 = arith.mulf %174, %154 : vector<8x32xf32>
    %176 = arith.negf %166 : vector<8x32xf32>
    %177 = math.exp %176 : vector<8x32xf32>
    %cst_39 = arith.constant 1.000000e+00 : f32
    %178 = vector.broadcast %cst_39 : f32 to vector<8x32xf32>
    %179 = arith.addf %178, %177 : vector<8x32xf32>
    %180 = arith.divf %178, %179 : vector<8x32xf32>
    %181 = math.tanh %168 : vector<8x32xf32>
    %182 = arith.mulf %180, %181 : vector<8x32xf32>
    %183 = arith.addf %175, %182 : vector<8x32xf32>
    %184 = arith.negf %169 : vector<8x32xf32>
    %185 = math.exp %184 : vector<8x32xf32>
    %cst_40 = arith.constant 1.000000e+00 : f32
    %186 = vector.broadcast %cst_40 : f32 to vector<8x32xf32>
    %187 = arith.addf %186, %185 : vector<8x32xf32>
    %188 = arith.divf %186, %187 : vector<8x32xf32>
    %189 = math.tanh %183 : vector<8x32xf32>
    %190 = arith.mulf %188, %189 : vector<8x32xf32>
    %191 = vector.extract_strided_slice %42 {offsets = [40, 0], sizes = [8, 128], strides = [1, 1]} : vector<64x128xf32> to vector<8x128xf32>
    %192 = arith.truncf %190 : vector<8x32xf32> to vector<8x32xbf16>
    %cst_41 = arith.constant dense<0.000000e+00> : vector<8x128xf32>
    %193 = tpu.matmul %192, %43, %cst_41 {dimension_numbers = #tpu.dot_dimension_numbers<[1], [0], [0], [1], [0, 0, 1, 1], [], []>} : vector<8x32xbf16>, vector<32x128xbf16>, vector<8x128xf32> -> vector<8x128xf32>
    %194 = arith.addf %191, %193 : vector<8x128xf32>
    %195 = vector.extract_strided_slice %194 {offsets = [0, 0], sizes = [8, 32], strides = [1, 1]} : vector<8x128xf32> to vector<8x32xf32>
    %196 = vector.extract_strided_slice %194 {offsets = [0, 32], sizes = [8, 32], strides = [1, 1]} : vector<8x128xf32> to vector<8x32xf32>
    %197 = vector.extract_strided_slice %194 {offsets = [0, 64], sizes = [8, 32], strides = [1, 1]} : vector<8x128xf32> to vector<8x32xf32>
    %198 = vector.extract_strided_slice %194 {offsets = [0, 96], sizes = [8, 32], strides = [1, 1]} : vector<8x128xf32> to vector<8x32xf32>
    %199 = arith.negf %196 : vector<8x32xf32>
    %200 = math.exp %199 : vector<8x32xf32>
    %cst_42 = arith.constant 1.000000e+00 : f32
    %201 = vector.broadcast %cst_42 : f32 to vector<8x32xf32>
    %202 = arith.addf %201, %200 : vector<8x32xf32>
    %203 = arith.divf %201, %202 : vector<8x32xf32>
    %204 = arith.mulf %203, %183 : vector<8x32xf32>
    %205 = arith.negf %195 : vector<8x32xf32>
    %206 = math.exp %205 : vector<8x32xf32>
    %cst_43 = arith.constant 1.000000e+00 : f32
    %207 = vector.broadcast %cst_43 : f32 to vector<8x32xf32>
    %208 = arith.addf %207, %206 : vector<8x32xf32>
    %209 = arith.divf %207, %208 : vector<8x32xf32>
    %210 = math.tanh %197 : vector<8x32xf32>
    %211 = arith.mulf %209, %210 : vector<8x32xf32>
    %212 = arith.addf %204, %211 : vector<8x32xf32>
    %213 = arith.negf %198 : vector<8x32xf32>
    %214 = math.exp %213 : vector<8x32xf32>
    %cst_44 = arith.constant 1.000000e+00 : f32
    %215 = vector.broadcast %cst_44 : f32 to vector<8x32xf32>
    %216 = arith.addf %215, %214 : vector<8x32xf32>
    %217 = arith.divf %215, %216 : vector<8x32xf32>
    %218 = math.tanh %212 : vector<8x32xf32>
    %219 = arith.mulf %217, %218 : vector<8x32xf32>
    %220 = vector.extract_strided_slice %42 {offsets = [48, 0], sizes = [8, 128], strides = [1, 1]} : vector<64x128xf32> to vector<8x128xf32>
    %221 = arith.truncf %219 : vector<8x32xf32> to vector<8x32xbf16>
    %cst_45 = arith.constant dense<0.000000e+00> : vector<8x128xf32>
    %222 = tpu.matmul %221, %43, %cst_45 {dimension_numbers = #tpu.dot_dimension_numbers<[1], [0], [0], [1], [0, 0, 1, 1], [], []>} : vector<8x32xbf16>, vector<32x128xbf16>, vector<8x128xf32> -> vector<8x128xf32>
    %223 = arith.addf %220, %222 : vector<8x128xf32>
    %224 = vector.extract_strided_slice %223 {offsets = [0, 0], sizes = [8, 32], strides = [1, 1]} : vector<8x128xf32> to vector<8x32xf32>
    %225 = vector.extract_strided_slice %223 {offsets = [0, 32], sizes = [8, 32], strides = [1, 1]} : vector<8x128xf32> to vector<8x32xf32>
    %226 = vector.extract_strided_slice %223 {offsets = [0, 64], sizes = [8, 32], strides = [1, 1]} : vector<8x128xf32> to vector<8x32xf32>
    %227 = vector.extract_strided_slice %223 {offsets = [0, 96], sizes = [8, 32], strides = [1, 1]} : vector<8x128xf32> to vector<8x32xf32>
    %228 = arith.negf %225 : vector<8x32xf32>
    %229 = math.exp %228 : vector<8x32xf32>
    %cst_46 = arith.constant 1.000000e+00 : f32
    %230 = vector.broadcast %cst_46 : f32 to vector<8x32xf32>
    %231 = arith.addf %230, %229 : vector<8x32xf32>
    %232 = arith.divf %230, %231 : vector<8x32xf32>
    %233 = arith.mulf %232, %212 : vector<8x32xf32>
    %234 = arith.negf %224 : vector<8x32xf32>
    %235 = math.exp %234 : vector<8x32xf32>
    %cst_47 = arith.constant 1.000000e+00 : f32
    %236 = vector.broadcast %cst_47 : f32 to vector<8x32xf32>
    %237 = arith.addf %236, %235 : vector<8x32xf32>
    %238 = arith.divf %236, %237 : vector<8x32xf32>
    %239 = math.tanh %226 : vector<8x32xf32>
    %240 = arith.mulf %238, %239 : vector<8x32xf32>
    %241 = arith.addf %233, %240 : vector<8x32xf32>
    %242 = arith.negf %227 : vector<8x32xf32>
    %243 = math.exp %242 : vector<8x32xf32>
    %cst_48 = arith.constant 1.000000e+00 : f32
    %244 = vector.broadcast %cst_48 : f32 to vector<8x32xf32>
    %245 = arith.addf %244, %243 : vector<8x32xf32>
    %246 = arith.divf %244, %245 : vector<8x32xf32>
    %247 = math.tanh %241 : vector<8x32xf32>
    %248 = arith.mulf %246, %247 : vector<8x32xf32>
    %249 = vector.extract_strided_slice %42 {offsets = [56, 0], sizes = [8, 128], strides = [1, 1]} : vector<64x128xf32> to vector<8x128xf32>
    %250 = arith.truncf %248 : vector<8x32xf32> to vector<8x32xbf16>
    %cst_49 = arith.constant dense<0.000000e+00> : vector<8x128xf32>
    %251 = tpu.matmul %250, %43, %cst_49 {dimension_numbers = #tpu.dot_dimension_numbers<[1], [0], [0], [1], [0, 0, 1, 1], [], []>} : vector<8x32xbf16>, vector<32x128xbf16>, vector<8x128xf32> -> vector<8x128xf32>
    %252 = arith.addf %249, %251 : vector<8x128xf32>
    %253 = vector.extract_strided_slice %252 {offsets = [0, 0], sizes = [8, 32], strides = [1, 1]} : vector<8x128xf32> to vector<8x32xf32>
    %254 = vector.extract_strided_slice %252 {offsets = [0, 32], sizes = [8, 32], strides = [1, 1]} : vector<8x128xf32> to vector<8x32xf32>
    %255 = vector.extract_strided_slice %252 {offsets = [0, 64], sizes = [8, 32], strides = [1, 1]} : vector<8x128xf32> to vector<8x32xf32>
    %256 = vector.extract_strided_slice %252 {offsets = [0, 96], sizes = [8, 32], strides = [1, 1]} : vector<8x128xf32> to vector<8x32xf32>
    %257 = arith.negf %254 : vector<8x32xf32>
    %258 = math.exp %257 : vector<8x32xf32>
    %cst_50 = arith.constant 1.000000e+00 : f32
    %259 = vector.broadcast %cst_50 : f32 to vector<8x32xf32>
    %260 = arith.addf %259, %258 : vector<8x32xf32>
    %261 = arith.divf %259, %260 : vector<8x32xf32>
    %262 = arith.mulf %261, %241 : vector<8x32xf32>
    %263 = arith.negf %253 : vector<8x32xf32>
    %264 = math.exp %263 : vector<8x32xf32>
    %cst_51 = arith.constant 1.000000e+00 : f32
    %265 = vector.broadcast %cst_51 : f32 to vector<8x32xf32>
    %266 = arith.addf %265, %264 : vector<8x32xf32>
    %267 = arith.divf %265, %266 : vector<8x32xf32>
    %268 = math.tanh %255 : vector<8x32xf32>
    %269 = arith.mulf %267, %268 : vector<8x32xf32>
    %270 = arith.addf %262, %269 : vector<8x32xf32>
    %271 = arith.negf %256 : vector<8x32xf32>
    %272 = math.exp %271 : vector<8x32xf32>
    %cst_52 = arith.constant 1.000000e+00 : f32
    %273 = vector.broadcast %cst_52 : f32 to vector<8x32xf32>
    %274 = arith.addf %273, %272 : vector<8x32xf32>
    %275 = arith.divf %273, %274 : vector<8x32xf32>
    %276 = math.tanh %270 : vector<8x32xf32>
    %277 = arith.mulf %275, %276 : vector<8x32xf32>
    %278 = tpu.concatenate %74, %103, %132, %161, %190, %219, %248, %277 in 0 : vector<8x32xf32>, vector<8x32xf32>, vector<8x32xf32>, vector<8x32xf32>, vector<8x32xf32>, vector<8x32xf32>, vector<8x32xf32>, vector<8x32xf32> -> vector<64x32xf32>
    %c0_53 = arith.constant 0 : index
    %c0_54 = arith.constant 0 : index
    %c0_55 = arith.constant 0 : index
    %279 = vector.load %arg9[%c0_53, %c0_54, %c0_55] : memref<1x64x32xf32, #tpu.memory_space<vmem>>, vector<1x64x32xf32>
    %280 = vector.shape_cast %279 : vector<1x64x32xf32> to vector<64x32xf32>
    %281 = vector.shape_cast %278 : vector<64x32xf32> to vector<1x64x32xf32>
    tpu.vector_store %arg9[%c0_53, %c0_54, %c0_55], %281 {strides = array<i32>} : memref<1x64x32xf32, #tpu.memory_space<vmem>>, vector<1x64x32xf32>,
    return
  }
  func.func @transform_0(%arg0: i32) -> (i32, i32, i32) {
    %c0_i32 = arith.constant 0 : i32
    %c0_i32_0 = arith.constant 0 : i32
    %c0_i32_1 = arith.constant 0 : i32
    return %arg0, %c0_i32, %c0_i32_0 : i32, i32, i32
  }
  func.func @transform_1(%arg0: i32) -> (i32, i32, i32) {
    %c0_i32 = arith.constant 0 : i32
    %c0_i32_0 = arith.constant 0 : i32
    %c0_i32_1 = arith.constant 0 : i32
    return %arg0, %c0_i32, %c0_i32_0 : i32, i32, i32
  }
  func.func @transform_2(%arg0: i32) -> (i32, i32) {
    %c0_i32 = arith.constant 0 : i32
    %c0_i32_0 = arith.constant 0 : i32
    %c0_i32_1 = arith.constant 0 : i32
    return %c0_i32, %c0_i32_0 : i32, i32
  }
  func.func @transform_3(%arg0: i32) -> (i32, i32) {
    %c0_i32 = arith.constant 0 : i32
    %c0_i32_0 = arith.constant 0 : i32
    %c0_i32_1 = arith.constant 0 : i32
    return %c0_i32, %c0_i32_0 : i32, i32
  }
  func.func @transform_4(%arg0: i32) -> (i32, i32) {
    %c0_i32 = arith.constant 0 : i32
    %c0_i32_0 = arith.constant 0 : i32
    %c0_i32_1 = arith.constant 0 : i32
    return %c0_i32, %c0_i32_0 : i32, i32
  }
  func.func @transform_5(%arg0: i32) -> (i32, i32) {
    %c0_i32 = arith.constant 0 : i32
    %c0_i32_0 = arith.constant 0 : i32
    %c0_i32_1 = arith.constant 0 : i32
    return %c0_i32, %c0_i32_0 : i32, i32
  }
  func.func @transform_6(%arg0: i32) -> (i32, i32) {
    %c0_i32 = arith.constant 0 : i32
    %c0_i32_0 = arith.constant 0 : i32
    %c0_i32_1 = arith.constant 0 : i32
    return %c0_i32, %c0_i32_0 : i32, i32
  }
  func.func @transform_7(%arg0: i32) -> (i32, i32) {
    %c0_i32 = arith.constant 0 : i32
    %c0_i32_0 = arith.constant 0 : i32
    %c0_i32_1 = arith.constant 0 : i32
    return %c0_i32, %c0_i32_0 : i32, i32
  }
  func.func @transform_8(%arg0: i32) -> (i32, i32, i32) {
    %c0_i32 = arith.constant 0 : i32
    %c0_i32_0 = arith.constant 0 : i32
    %c0_i32_1 = arith.constant 0 : i32
    return %arg0, %c0_i32, %c0_i32_0 : i32, i32, i32
  }
}

</mosaic_0001>

<bundles_post_ra>
// kernel: char_cnn_tagger_forward.1
= control target key start
LH: loop header
LB: loop body
LE: loop exit
PB: predicated region body
PF: predicated region fallthrough
CT: control target
= control target key end

     0   :  { %s2141_s27 = smov 0   ;;  %s2675_s0 = inlined_call_operand.vmem [shape: s32[2,64,192], index: 0, kind: input, shape index: {}]   ;;  %s2676_s1 = inlined_call_operand.vmem [shape: s32[2,64,1], index: 1, kind: input, shape index: {}]   ;;  %s2677_s2 = inlined_call_operand.vmem [shape: bf16[192,192], index: 2, kind: input, shape index: {}]   ;;  %s2678_s3 = inlined_call_operand.vmem [shape: f32[1,192], index: 3, kind: input, shape index: {}]   ;;  %s2679_s4 = inlined_call_operand.vmem [shape: bf16[64,128], index: 4, kind: input, shape index: {}]   ;;  %s2680_s5 = inlined_call_operand.vmem [shape: bf16[32,128], index: 5, kind: input, shape index: {}]   ;;  %s2681_s6 = inlined_call_operand.vmem [shape: bf16[32,128], index: 6, kind: input, shape index: {}]   ;;  %s2682_s7 = inlined_call_operand.vmem [shape: f32[1,128], index: 7, kind: input, shape index: {}]   ;;  %s2683_s8 = inlined_call_operand.vmem [shape: f32[2,64,32], index: 8, kind: output, shape index: {}]  }
   0x1 LB: > { %s1641_s28 = sadd.s32 4294967295, %s2088_s27   ;;  %p1645_p0 = scmp.ge.s32.totalorder %s2088_s27, 1  ;;  %s2088_s27 = sphi %s2141_s27, %s18_s27  }
   0x2   : > { %p272_p1 = scmp.lt.s32.totalorder %s2088_s27, 3 }
   0x4   : > { %p273_p2 = pnand %p1645_p0, %p272_p1 }
   0x5   : > { %p311_p3 = scmp.lt.s32.totalorder (!%p273_p2), %s1641_s28, 1  ;;  %s2093_s24 = smov (!%p273_p2), 32  }
   0x6   : > { %276 = sbr.rel (%p273_p2) target bundleno = 4988 (0x137c), region = 52  ;;  %s2094_s25 = smov (!%p273_p2), 96  }
   0x7   : > { %s2095_s26 = smov (!%p273_p2), 64  }
   0xb   : > { %v1726_v0 = vld [vmem:[%s2677_s2 + $0x70] sm:$0xf]  ;;  %v1871_v1 = vld [vmem:[%s2677_s2 + $0x74] sm:$0xf0]  ;;  %v1718_v2 = vld [vmem:[%s2677_s2 + $0x60] sm:$0xf]  ;;  %v327_v13 = vlaneseq }
   0xc   : > { %v1727_v3 = vor.u32 %v1871_v1, %v1726_v0  ;;  %v1869_v4 = vld [vmem:[%s2677_s2 + $0x64] sm:$0xf0]  ;;  %v1758_v5 = vld [vmem:[%s2677_s2 + $0xb0] sm:$0xf]  ;;  %v1879_v6 = vld [vmem:[%s2677_s2 + $0xb4] sm:$0xf0] }
   0xd   : > { %v1719_v7 = vor.u32 %v1869_v4, %v1718_v2  ;;  %v1759_v8 = vor.u32 %v1879_v6, %v1758_v5  ;;  %v1750_v9 = vld [vmem:[%s2677_s2 + $0xa0] sm:$0xf]  ;;  %v1877_v10 = vld [vmem:[%s2677_s2 + $0xa4] sm:$0xf0]  ;;  %v1710_v11 = vld [vmem:[%s2677_s2 + $0x50] sm:$0xf] }
   0xe   : > { %567 = vmatpush.bf16.msra.mxu0 %v1727_v3  ;;  %v1867_v12 = vld [vmem:[%s2677_s2 + $0x54] sm:$0xf0]  ;;  %v1751_v14 = vor.u32 %v1877_v10, %v1750_v9  ;;  %v1742_v15 = vld [vmem:[%s2677_s2 + $0x90] sm:$0xf]  ;;  %v1870_v18 = vld [vmem:[%s2677_s2 + $0x74] sm:$0xf] }
   0xf   : > { %600 = vmatpush.bf16.msra.mxu1 %v1759_v8  ;;  %v1875_v16 = vld [vmem:[%s2677_s2 + $0x94] sm:$0xf0]  ;;  %v1711_v17 = vor.u32 %v1867_v12, %v1710_v11  ;;  %v1728_v19 = vld [vmem:[%s2677_s2 + $0x78] sm:$0xf0]  ;;  %v1702_v20 = vld [vmem:[%s2677_s2 + $0x40] sm:$0xf] }
  0x10   : > { %v1865_v21 = vld [vmem:[%s2677_s2 + $0x44] sm:$0xf0]  ;;  %v1731_v22 = vor.u32 %v1870_v18, %v1728_v19  ;;  %v2199_v23 = vand.u32 127, %v327_v13  ;;  %v1743_v24 = vor.u32 %v1875_v16, %v1742_v15  ;;  %v1734_v25 = vld [vmem:[%s2677_s2 + $0x80] sm:$0xf]  ;;  %s2685_s28 = smov (!%p311_p3, %s1641_s28), 1 }
  0x11   : > { %v1868_v26 = vld [vmem:[%s2677_s2 + $0x64] sm:$0xf]  ;;  %v1873_v27 = vld [vmem:[%s2677_s2 + $0x84] sm:$0xf0]  ;;  %v1720_v29 = vld [vmem:[%s2677_s2 + $0x68] sm:$0xf0]  ;;  %v1703_v30 = vor.u32 %v1865_v21, %v1702_v20 }
  0x12   : > { %568 = vmatpush.bf16.msra.mxu0 %v1719_v7  ;;  %625 = vmatpush.bf16.msra.mxu2 %v1731_v22  ;;  %v329_v28 = vadd.s32 128, %v2199_v23  ;;  %v1723_v31 = vor.u32 %v1868_v26, %v1720_v29  ;;  %v1866_v32 = vld [vmem:[%s2677_s2 + $0x54] sm:$0xf]  ;;  %v1712_v33 = vld [vmem:[%s2677_s2 + $0x58] sm:$0xf0]  ;;  %s1853_s15 = sshll.u32 %s2685_s28, 7  ;;  %v1735_v37 = vor.u32 %v1873_v27, %v1734_v25 }
  0x13   : > { %601 = vmatpush.bf16.msra.mxu1 %v1751_v14  ;;  %v1694_v34 = vld [vmem:[%s2677_s2 + $0x30] sm:$0xf]  ;;  %v1863_v35 = vld [vmem:[%s2677_s2 + $0x34] sm:$0xf0]  ;;  %s2236_s18 = scalar_lea.vmem %s2675_s0, %s1853_s15  ;;  %v1878_v38 = vld [vmem:[%s2677_s2 + $0xb4] sm:$0xf]  ;;  %v1715_v42 = vor.u32 %v1866_v32, %v1712_v33 }
  0x14   : > { %v2231_v36 = vand.u32 31, %v329_v28  ;;  %v1686_v39 = vld [vmem:[%s2677_s2 + $0x20] sm:$0xf]  ;;  %v333_v40 = vld [vmem:[%s2236_s18 + $0x8] sm:$0xff]  ;;  %v335_v41 = vld [vmem:[%s2236_s18 + $0x18] sm:$0xff]  ;;  %v1695_v43 = vor.u32 %v1863_v35, %v1694_v34  ;;  %v2090_v48 = vmov 0.0  }
  0x15   : > { %v1864_v44 = vld [vmem:[%s2677_s2 + $0x44] sm:$0xf]  ;;  %v1704_v45 = vld [vmem:[%s2677_s2 + $0x48] sm:$0xf0]  ;;  %v1760_v46 = vld [vmem:[%s2677_s2 + $0xb8] sm:$0xf0] }
  0x16   : > { %569 = vmatpush.bf16.msra.mxu0 %v1711_v17  ;;  %626 = vmatpush.bf16.msra.mxu2 %v1723_v31  ;;  %vm349_vm0 = vcmp.eq.s32.totalorder %v333_v40, %v2231_v36  ;;  %vm351_vm1 = vcmp.eq.s32.totalorder %v335_v41, %v2231_v36  ;;  %v1861_v47 = vld [vmem:[%s2677_s2 + $0x24] sm:$0xf0]  ;;  %v1763_v51 = vor.u32 %v1878_v38, %v1760_v46  ;;  %v1876_v52 = vld [vmem:[%s2677_s2 + $0xa4] sm:$0xf]  ;;  %vm554_vm2 = vcmask 523264   ;;  %v334_v11 = vld [vmem:[%s2236_s18 + $0x10] sm:$0xff] }
  0x17   : > { %602 = vmatpush.bf16.msra.mxu1 %v1743_v24  ;;  %v1653_v49 = vsel %vm349_vm0, 1.0, %v2090_v48  ;;  %v1655_v50 = vsel %vm351_vm1, 1.0, %v2090_v48  ;;  %v1752_v54 = vld [vmem:[%s2677_s2 + $0xa8] sm:$0xf0]  ;;  %v1707_v55 = vor.u32 %v1864_v44, %v1704_v45  ;;  %v1862_v56 = vld [vmem:[%s2677_s2 + $0x34] sm:$0xf]  ;;  %v1687_v58 = vor.u32 %v1861_v47, %v1686_v39 }
  0x18   : > { %v397_v53 = vpack.c.bf16 %v1655_v50, %v1653_v49  ;;  %658 = vmatpush.bf16.msra.mxu3 %v1763_v51  ;;  %v1755_v57 = vor.u32 %v1876_v52, %v1752_v54  ;;  %v1696_v59 = vld [vmem:[%s2677_s2 + $0x38] sm:$0xf0]  ;;  %v1874_v60 = vld [vmem:[%s2677_s2 + $0x94] sm:$0xf]  ;;  %v1678_v62 = vld [vmem:[%s2677_s2 + $0x10] sm:$0xf] }
  0x19   : > { %v1744_v61 = vld [vmem:[%s2677_s2 + $0x98] sm:$0xf0]  ;;  %v1859_v63 = vld [vmem:[%s2677_s2 + $0x14] sm:$0xf0]  ;;  %v1699_v0 = vor.u32 %v1862_v56, %v1696_v59  ;;  %v1860_v1 = vld [vmem:[%s2677_s2 + $0x24] sm:$0xf] }
  0x1a   : > { %570 = vmatpush.bf16.msra.mxu0 %v1703_v30  ;;  %627 = vmatpush.bf16.msra.mxu2 %v1715_v42  ;;  %v1747_v2 = vor.u32 %v1874_v60, %v1744_v61  ;;  %v1679_v3 = vor.u32 %v1859_v63, %v1678_v62  ;;  %v1688_v4 = vld [vmem:[%s2677_s2 + $0x28] sm:$0xf0]  ;;  %v1872_v5 = vld [vmem:[%s2677_s2 + $0x84] sm:$0xf]  ;;  %v1670_v7 = vld [vmem:[%s2677_s2] sm:$0xf] }
  0x1b   : > { %603 = vmatpush.bf16.msra.mxu1 %v1735_v37  ;;  %v1736_v6 = vld [vmem:[%s2677_s2 + $0x88] sm:$0xf0]  ;;  %v1857_v8 = vld [vmem:[%s2677_s2 + $0x4] sm:$0xf0]  ;;  %v2306_v9 = vand.u32 31, %v2199_v23  ;;  %v332_v10 = vld [vmem:[%s2236_s18] sm:$0xff]  ;;  %v1691_v12 = vor.u32 %v1860_v1, %v1688_v4 }
  0x1c   : > { %659 = vmatpush.bf16.msra.mxu3 %v1755_v57  ;;  %v1739_v13 = vor.u32 %v1872_v5, %v1736_v6  ;;  %v1671_v14 = vor.u32 %v1857_v8, %v1670_v7  ;;  %v1858_v15 = vld [vmem:[%s2677_s2 + $0x14] sm:$0xf]  ;;  %v1680_v16 = vld [vmem:[%s2677_s2 + $0x18] sm:$0xf0]  ;;  %v1856_v18 = vld [vmem:[%s2677_s2 + $0x4] sm:$0xf] }
  0x1d   : > { %vm348_vm3 = vcmp.eq.s32.totalorder %v332_v10, %v2306_v9  ;;  %vm350_vm4 = vcmp.eq.s32.totalorder %v334_v11, %v2306_v9  ;;  %v1683_v17 = vor.u32 %v1858_v15, %v1680_v16  ;;  %v1672_v19 = vld [vmem:[%s2677_s2 + $0x8] sm:$0xf0]  ;;  %v2091_v20 = vmov 1.0|1.0   ;;  %s1854_s9 = sshll.u32 %s2685_s28, 6  ;;  %v339_v31 = vld [vmem:[%s2236_s18 + $0x38] sm:$0xff] }
  0x1e   : > { %571 = vmatpush.bf16.msra.mxu0 %v1695_v43  ;;  %1772 = vmatmul.msk.bf16.vlgmr.msra.gmra.mxu1 %vm554_vm2, %v397_v53  ;;  %vm1764_vm5 = vmpackc.low %vm350_vm4, %vm348_vm3  ;;  %v1675_v21 = vor.u32 %v1856_v18, %v1672_v19  ;;  %s2333_s12 = scalar_lea.vmem %s2676_s1, %s1854_s9  ;;  %v2092_v24 = vmov 0   ;;  %v428_v26 = vld [vmem:[%s2678_s3] sm:$0x3]  ;;  %v337_v30 = vld [vmem:[%s2236_s18 + $0x28] sm:$0xff]  ;;  %vm355_vm7 = vcmp.eq.s32.totalorder %v339_v31, %v2231_v36  ;;  %s325_s20 = scalar_lea.vmem %s2683_s8, %s1854_s9 }
  0x1f   : > { %628 = vmatpush.bf16.msra.mxu2 %v1707_v55  ;;  %v851_v22 = vld [vmem:[%s2333_s12] sm:$0xff]  ;;  %1912 = vset.pattern.permute.xlu1 %v2092_v24  ;;  %v852_v25 = vld [vmem:[%s2333_s12 + $0x8] sm:$0xff]  ;;  %v2343_v28 = vperm.slane %v428_v26, 0  ;;  %v1883_v32 = vld [vmem:[%s2679_s4 + $0x18] sm:$0xff]  ;;  %vm353_vm6 = vcmp.eq.s32.totalorder %v337_v30, %v2231_v36  ;;  %v1659_v39 = vsel %vm355_vm7, 1.0, %v2090_v48  ;;  %v2379_v52 = vperm.slane %v428_v26, 1 }
  0x20   : > { %660 = vmatpush.bf16.msra.mxu3 %v1747_v2  ;;  %1933 = vset.pattern.permute.xlu0 %v2092_v24  ;;  %v336_v34 = vld [vmem:[%s2236_s18 + $0x20] sm:$0xff]  ;;  %v338_v35 = vld [vmem:[%s2236_s18 + $0x30] sm:$0xff]  ;;  %v1885_v37 = vld [vmem:[%s2680_s5 + $0x8] sm:$0xff]  ;;  %v1657_v38 = vsel %vm353_vm6, 1.0, %v2090_v48 }
  0x21   : > { %860 = vperm.xlu1 %1912, %v851_v22   ;;  %1974 = vset.pattern.permute.xlu2 %v2092_v24  ;;  %vm352_vm8 = vcmp.eq.s32.totalorder %v336_v34, %v2306_v9  ;;  %v2364_v40 = vld [vmem:[%s2681_s6 + $0x8] sm:$0xff]  ;;  %v399_v41 = vpack.c.bf16 %v1659_v39, %v1657_v38  ;;  %vm354_vm9 = vcmp.eq.s32.totalorder %v338_v35, %v2306_v9  ;;  %v1882_v42 = vld [vmem:[%s2679_s4 + $0x10] sm:$0xff]  ;;  %v343_v51 = vld [vmem:[%s2236_s18 + $0x58] sm:$0xff] }
  0x22   : > { %572 = vmatpush.bf16.msra.mxu0 %v1687_v58  ;;  %958 = vmatpush.bf16.msrb.mxu1 %v1885_v37  ;;  %vm1766_vm10 = vmpackc.low %vm354_vm9, %vm352_vm8  ;;  %v341_v50 = vld [vmem:[%s2236_s18 + $0x48] sm:$0xff]  ;;  %vm359_vm12 = vcmp.eq.s32.totalorder %v343_v51, %v2231_v36  ;;  %v340_v54 = vld [vmem:[%s2236_s18 + $0x40] sm:$0xff]  ;;  %vm939_vm8 = vcmask 261120  }
  0x23   : > { %629 = vmatpush.bf16.msra.mxu2 %v1699_v0  ;;  %vm357_vm11 = vcmp.eq.s32.totalorder %v341_v50, %v2231_v36  ;;  %v342_v55 = vld [vmem:[%s2236_s18 + $0x50] sm:$0xff]  ;;  %v1663_v58 = vsel %vm359_vm12, 1.0, %v2090_v48  ;;  %vm356_vm13 = vcmp.eq.s32.totalorder %v340_v54, %v2306_v9  ;;  %v345_v7 = vld [vmem:[%s2236_s18 + $0x68] sm:$0xff]  ;;  %v347_v8 = vld [vmem:[%s2236_s18 + $0x78] sm:$0xff] }
  0x24   : > { %661 = vmatpush.bf16.msra.mxu3 %v1739_v13  ;;  %v1661_v57 = vsel %vm357_vm11, 1.0, %v2090_v48  ;;  %vm358_vm14 = vcmp.eq.s32.totalorder %v342_v55, %v2306_v9  ;;  %v1881_v10 = vld [vmem:[%s2679_s4 + $0x8] sm:$0xff]  ;;  %vm361_vm0 = vcmp.eq.s32.totalorder %v345_v7, %v2231_v36  ;;  %vm363_vm1 = vcmp.eq.s32.totalorder %v347_v8, %v2231_v36  ;;  %v344_v11 = vld [vmem:[%s2236_s18 + $0x60] sm:$0xff] }
  0x25   : > { %v401_v63 = vpack.c.bf16 %v1663_v58, %v1661_v57  ;;  %vm1768_vm15 = vmpackc.low %vm358_vm14, %vm356_vm13  ;;  %v1884_v13 = vld [vmem:[%s2680_s5] sm:$0xff]  ;;  %v1667_v15 = vsel %vm363_vm1, 1.0, %v2090_v48  ;;  %vm360_vm3 = vcmp.eq.s32.totalorder %v344_v11, %v2306_v9 }
  0x26   : > { %573 = vmatpush.bf16.msra.mxu0 %v1679_v3  ;;  %v2430_v16 = vld [vmem:[%s2681_s6] sm:$0xff]  ;;  %959 = vmatpush.bf16.msrb.mxu1 %v1884_v13 }
  0x27   : > { %630 = vmatpush.bf16.msra.mxu2 %v1691_v12  ;;  %1784 = vmatmul.msk.bf16.vlgmr.msra.gmra.mxu3 %vm554_vm2, %v397_v53  ;;  %v346_v12 = vld [vmem:[%s2236_s18 + $0x70] sm:$0xff]  ;;  %v1880_v36 = vld [vmem:[%s2679_s4] sm:$0xff] }
  0x28   : > { %1021 = vmatpush.bf16.msrb.mxu3 %v1883_v32  ;;  %vm362_vm4 = vcmp.eq.s32.totalorder %v346_v12, %v2306_v9 }
  0x29   : > { %863 = vperm.xlu1 %1912, %v852_v25  }
  0x2a   : > { %574 = vmatpush.bf16.msra.mxu0 %v1671_v14  ;;  %v1665_v14 = vsel %vm361_vm0, 1.0, %v2090_v48  ;;  %1489 = vmatpush.bf16.msra.mxu1 %v2364_v40 }
  0x2b   : > { %631 = vmatpush.bf16.msra.mxu2 %v1683_v17  ;;  %v403_v17 = vpack.c.bf16 %v1667_v15, %v1665_v14 }
  0x2c   : > { %1022 = vmatpush.bf16.msrb.mxu3 %v1882_v42 }
  0x2d   : > { %1765 = vmatmul.msk.bf16.vlgmr.msra.gmra.mxu0 %vm1764_vm5, %v2091_v20 }
  0x2e   : > { %1083 = vmatpush.bf16.msrb.mxu0 %v2364_v40  ;;  %1773 = vmatmul.msk.bf16.gmra.mxu1 %vm554_vm2, %v399_v41 }
  0x2f   : > { %632 = vmatpush.bf16.msra.mxu2 %v1675_v21  ;;  %1490 = vmatpush.bf16.msra.mxu1 %v2430_v16 }
  0x30   : > { %1023 = vmatpush.bf16.msrb.mxu3 %v1881_v10 }
  0x32   : > { %1777 = vmatmul.msk.bf16.vlgmr.msra.gmra.mxu2 %vm1764_vm5, %v2091_v20  ;;  %vm1770_vm5 = vmpackc.low %vm362_vm4, %vm360_vm3  ;;  %1084 = vmatpush.bf16.msrb.mxu0 %v2430_v16 }
  0x33   : > { %1141 = vmatpush.bf16.msrb.mxu2 %v2364_v40 }
  0x34   : > { %1024 = vmatpush.bf16.msrb.mxu3 %v1880_v36 }
  0x36   : > { %1199 = vmatpush.bf16.msra.mxu0 %v2364_v40 }
  0x37   : > { %1785 = vmatmul.msk.bf16.gmra.mxu3 %vm554_vm2, %v399_v41  ;;  %1142 = vmatpush.bf16.msrb.mxu2 %v2430_v16 }
  0x3a   : > { %1200 = vmatpush.bf16.msra.mxu0 %v2430_v16 }
  0x3b   : > { %1257 = vmatpush.bf16.msra.mxu2 %v2364_v40 }
  0x3d   : > { %1767 = vmatmul.msk.bf16.gmra.mxu0 %vm1766_vm10, %v2091_v20 }
  0x3e   : > { %1774 = vmatmul.msk.bf16.gmra.mxu1 %vm554_vm2, %v401_v63 }
  0x3f   : > { %1258 = vmatpush.bf16.msra.mxu2 %v2430_v16 }
  0x42   : > { %1779 = vmatmul.msk.bf16.gmra.mxu2 %vm1766_vm10, %v2091_v20 }
  0x47   : > { %1786 = vmatmul.msk.bf16.gmra.mxu3 %vm554_vm2, %v401_v63 }
  0x4d   : > { %1769 = vmatmul.msk.bf16.gmra.mxu0 %vm1768_vm15, %v2091_v20 }
  0x4e   : > { %1775 = vmatmul.msk.bf16.gmra.mxu1 %vm554_vm2, %v403_v17 }
  0x52   : > { %1781 = vmatmul.msk.bf16.gmra.mxu2 %vm1768_vm15, %v2091_v20 }
  0x57   : > { %1787 = vmatmul.msk.bf16.gmra.mxu3 %vm554_vm2, %v403_v17 }
  0x5d   : > { %1771 = vmatmul.msk.bf16.gmra.mxu0 %vm1770_vm5, %v2091_v20 }
  0x62   : > { %1783 = vmatmul.msk.bf16.gmra.mxu2 %vm1770_vm5, %v2091_v20 }
  0x6d   : > { %1085 = vmatmul.bf16.vlgmr.msrb.gmra.mxu0 %v2092_v24 }
  0x6e   : > { %1315 = vmatpush.bf16.msrb.mxu0 %v2364_v40 }
  0x72   : > { %1316 = vmatpush.bf16.msrb.mxu0 %v2430_v16 }
  0x93   : > { %v861_v9 = vpop.permute.xlu1 %860 }
  0x94   : > { %vm883_vm6 = vcmp.eq.s32.totalorder %v861_v9, %v2199_v23 }
  0x95   : > { %v1788_v18 = vsel %vm883_vm6, 1.0, %v2090_v48 }
  0x9b   : > { %v605_v27 = vpop.f32.mrf.mxu1  ;;  %v864_v19 = vpop.permute.xlu1 %863 }
  0x9c   : > { %vm884_vm7 = vcmp.eq.s32.totalorder %v864_v19, %v2199_v23 }
  0x9d   : > { %v1789_v20 = vsel %vm884_vm7, 1.0, %v2090_v48 }
  0x9e   : > { %v907_v21 = vpack.c.bf16 %v1789_v20, %v1788_v18 }
  0xa0   : > { %1824 = vmatmul.msk.bf16.vlgmr.msrb.gmra.mxu3 %vm554_vm2, %v907_v21 }
  0xa3   : > { %v607_v46 = vpop.f32.mrf.mxu1 }
  0xaa   : > { %v576_v29 = vpop.f32.mrf.mxu0  ;;  %v663_v49 = vpop.f32.mrf.mxu3 }
  0xab   : > { %v577_v33 = vadd.f32 %v576_v29, %v2343_v28  ;;  %v610_v25 = vpop.f32.mrf.mxu1 }
  0xad   : > { %v606_v43 = vadd.f32 %v605_v27, %v577_v33 }
  0xaf   : > { %1986 = vtanh.f32 %v606_v43 }
  0xb2   : > { %v578_v44 = vpop.f32.mrf.mxu0  ;;  %v665_v1 = vpop.f32.mrf.mxu3 }
  0xb3   : > { %v579_v45 = vadd.f32 %v578_v44, %v2343_v28  ;;  %v612_v38 = vpop.f32.mrf.mxu1 }
  0xb5   : > { %v608_v47 = vadd.f32 %v607_v46, %v579_v45  ;;  %v634_v53 = vpop.f32.mrf.mxu2  ;;  %v2388_v59 = vpop.eup %1986 }
  0xb6   : > { %v635_v56 = vadd.f32 %v634_v53, %v2379_v52 }
  0xb7   : > { %1988 = vtanh.f32 %v608_v47 }
  0xb8   : > { %v664_v62 = vadd.f32 %v663_v49, %v635_v56 }
  0xba   : > { %1990 = vtanh.f32 %v664_v62  ;;  %v581_v22 = vpop.f32.mrf.mxu0  ;;  %v668_v31 = vpop.f32.mrf.mxu3 }
  0xbb   : > { %v582_v26 = vadd.f32 %v581_v22, %v2343_v28 }
  0xbd   : > { %v2392_v60 = vpop.eup %1988  ;;  %v636_v0 = vpop.f32.mrf.mxu2  ;;  %v2456_v29 = vadd.f32 %v610_v25, %v582_v26 }
  0xbe   : > { %v1913_v61 = vpack.i.bf16 %v2392_v60, %v2388_v59  ;;  %v637_v2 = vadd.f32 %v636_v0, %v2379_v52 }
  0xc0   : > { %1914 = vrot.lane.b32.xlu2 %v1913_v61, %s2093_s24  ;;  %1903 = vrot.lane.b32.xlu0 %v1913_v61, %s2094_s25  ;;  %v666_v3 = vadd.f32 %v665_v1, %v637_v2  ;;  %v2403_v4 = vpop.eup %1990 }
  0xc2   : > { %1992 = vtanh.f32 %v666_v3  ;;  %v583_v24 = vpop.f32.mrf.mxu0  ;;  %v2466_v54 = vpop.f32.mrf.mxu3 }
  0xc3   : > { %v584_v39 = vadd.f32 %v583_v24, %v2343_v28  ;;  %v2499_v24 = vld [vmem:[%s2682_s7] ss:$0 sm:$0xff] }
  0xc5   : > { %v639_v32 = vpop.f32.mrf.mxu2  ;;  %v2464_v46 = vadd.f32 %v612_v38, %v584_v39 }
  0xc6   : > { %v640_v34 = vadd.f32 %v639_v32, %v2379_v52 }
  0xc8   : > { %1908 = vrot.lane.b32.xlu0 %v1913_v61, %s2095_s26  ;;  %v2406_v5 = vpop.eup %1992  ;;  %v2459_v37 = vadd.f32 %v668_v31, %v640_v34  ;;  %v615_v61 = vpop.f32.mrf.mxu1 }
  0xc9   : > { %v1918_v6 = vpack.i.bf16 %v2406_v5, %v2403_v4 }
  0xca   : > { %v673_v7 = vpop.f32.mrf.mxu3 }
  0xcb   : > { %1919 = vrot.lane.b32.xlu2 %v1918_v6, %s2094_s25 }
  0xcd   : > { %v2468_v55 = vpop.f32.mrf.mxu2 }
  0xd2   : > { %v675_v36 = vpop.f32.mrf.mxu3 }
  0xd5   : > { %v644_v8 = vpop.f32.mrf.mxu2 }
  0xd6   : > { %v645_v10 = vadd.f32 %v644_v8, %v2379_v52 }
  0xd8   : > { %v2477_v11 = vadd.f32 %v673_v7, %v645_v10 }
  0xda   : > { %v678_v25 = vpop.f32.mrf.mxu3 }
  0xdd   : > { %v646_v14 = vpop.f32.mrf.mxu2 }
  0xde   : > { %v647_v15 = vadd.f32 %v646_v14, %v2379_v52 }
  0xe0   : > { %v2483_v17 = vadd.f32 %v675_v36, %v647_v15 }
  0xe5   : > { %v649_v21 = vpop.f32.mrf.mxu2 }
  0xe6   : > { %v650_v22 = vadd.f32 %v649_v21, %v2379_v52 }
  0xe8   : > { %v2489_v26 = vadd.f32 %v678_v25, %v650_v22 }
 0x11a   : > { %v1915_v30 = vpop.permute.xlu2 %1914 }
 0x11b   : > { %v1917_v49 = vunpack.i.h.bf16 %v1915_v30  ;;  %v1916_v50 = vunpack.i.l.bf16 %v1915_v30 }
 0x125   : > { %v1920_v47 = vpop.permute.xlu2 %1919 }
 0x126   : > { %v1922_v58 = vunpack.i.h.bf16 %v1920_v47  ;;  %v1921_v62 = vunpack.i.l.bf16 %v1920_v47 }
 0x132   : > { %v1904_v27 = vpop.permute.xlu0 %1903 }
 0x133   : > { %v1906_v33 = vunpack.i.h.bf16 %v1904_v27  ;;  %v1905_v35 = vunpack.i.l.bf16 %v1904_v27 }
 0x135   : > { %v732_v41 = vmax.f32 %v2392_v60, %v1906_v33  ;;  %v731_v43 = vmax.f32 %v2388_v59, %v1905_v35  ;;  %v586_v60 = vpop.f32.mrf.mxu0  ;;  %v2494_v35 = vpop.f32.mrf.mxu3 }
 0x136   : > { %v587_v0 = vadd.f32 %v586_v60, %v2343_v28 }
 0x138   : > { %v2473_v3 = vadd.f32 %v615_v61, %v587_v0 }
 0x13a   : > { %v1909_v42 = vpop.permute.xlu0 %1908 }
 0x13b   : > { %v1911_v44 = vunpack.i.h.bf16 %v1909_v42  ;;  %v1910_v45 = vunpack.i.l.bf16 %v1909_v42 }
 0x13d   : > { %v763_v51 = vmax.f32 %v731_v43, %v1910_v45  ;;  %v764_v53 = vmax.f32 %v732_v41, %v1911_v44  ;;  %v588_v12 = vpop.f32.mrf.mxu0  ;;  %v1026_v38 = vpop.f32.mrf.mxu3 }
 0x13f   : > { %v795_v56 = vmax.f32 %v763_v51, %v1916_v50  ;;  %v796_v57 = vmax.f32 %v764_v53, %v1917_v49 }
 0x141   : > { %v803_v59 = vmax.f32 %v795_v56, %v2403_v4  ;;  %v804_v63 = vmax.f32 %v796_v57, %v2406_v5  ;;  %v617_v4 = vpop.f32.mrf.mxu1  ;;  %v589_v5 = vadd.f32 %v588_v12, %v2343_v28 }
 0x143   : > { %v843_v1 = vmax.f32 %v803_v59, %v1921_v62  ;;  %v844_v2 = vmax.f32 %v804_v63, %v1922_v58  ;;  %v2480_v13 = vadd.f32 %v617_v4, %v589_v5  ;;  %v2516_v4 = vpop.f32.mrf.mxu2 }
 0x145   : > { %v919_v6 = vpack.c.bf16 %v844_v2, %v843_v1  ;;  %v591_v9 = vpop.f32.mrf.mxu0  ;;  %v1028_v14 = vpop.f32.mrf.mxu3 }
 0x146   : > { %v592_v18 = vadd.f32 %v591_v9, %v2343_v28 }
 0x147   : > { %1804 = vmatmul.msk.bf16.vlgmr.msrb.gmra.mxu1 %vm939_vm8, %v919_v6 }
 0x149   : > { %v620_v19 = vpop.f32.mrf.mxu1 }
 0x14a   : > { %v2486_v20 = vadd.f32 %v620_v19, %v592_v18 }
 0x14d   : > { %v593_v27 = vpop.f32.mrf.mxu0 }
 0x14e   : > { %v594_v30 = vadd.f32 %v593_v27, %v2343_v28  ;;  %v642_v27 = vadd.f32 %v2468_v55, %v2379_v52 }
 0x151   : > { %v622_v31 = vpop.f32.mrf.mxu1 }
 0x152   : > { %v2492_v32 = vadd.f32 %v622_v31, %v594_v30  ;;  %v671_v31 = vadd.f32 %v2466_v54, %v642_v27 }
 0x155   : > { %v1086_v33 = vpop.f32.mrf.mxu0 }
 0x15d   : > { %v1088_v34 = vpop.f32.mrf.mxu0 }
 0x1c4   : > { %v961_v39 = vpop.f32.mrf.mxu1 }
 0x1c5   : > { %v1027_v41 = vadd.f32 %v1026_v38, %v961_v39 }
 0x1c7   : > { %v1050_v42 = vadd.f32 %v2499_v24, %v1027_v41 }
 0x1c9   : > { %v1090_v43 = vadd.f32 %v1086_v33, %v1050_v42 }
 0x1cb   : > { %1994 = vtanh.f32 %v1090_v43  ;;  %v1836_v44 = vmul.f32 -1.442695, %v1090_v43 }
 0x1cc   : > { %v963_v5 = vpop.f32.mrf.mxu1 }
 0x1cd   : > { %1996 = vpow2.f32 %v1836_v44  ;;  %v1029_v15 = vadd.f32 %v1028_v14, %v963_v5 }
 0x1cf   : > { %v1051_v36 = vadd.f32 %v2499_v24, %v1029_v15 }
 0x1d1   : > { %v1995_v28 = vpop.eup %1994 }
 0x1d2   : > { %1113 = vrot.lane.b32.xlu0 %v1995_v28, %s2095_s26 }
 0x1d3   : > { %v1997_v45 = vpop.eup %1996 }
 0x1d4   : > { %v1094_v47 = vadd.f32 1.0, %v1997_v45 }
 0x1d6   : > { %1998 = vrcp.f32 %v1094_v47  ;;  %v1106_v57 = vand.u32 2147483648, %v1094_v47  ;;  %vm1100_vm10 = vweird.f32 %v1094_v47  ;;  %v1104_v58 = vand.u32 2147483647, %v1094_v47 }
 0x1d8   : > { %v1107_v61 = vor.u32 1.1754944e-38, %v1106_v57  ;;  %vm1105_vm12 = vcmp.eq.f32.partialorder %v1104_v58, 8.507059e+37 }
 0x1dc   : > { %v1999_v49 = vpop.eup %1998 }
 0x1dd   : > { %v1096_v50 = vmul.f32 %v1999_v49, %v1094_v47  ;;  %vm1101_vm9 = vweird.f32 %v1999_v49 }
 0x1de   : > { %vm1102_vm11 = vmor %vm1100_vm10, %vm1101_vm9 }
 0x1df   : > { %v1097_v51 = vsub.f32 1.0, %v1096_v50 }
 0x1e1   : > { %v1098_v53 = vmul.f32 %v1999_v49, %v1097_v51 }
 0x1e3   : > { %v1099_v56 = vadd.f32 %v1999_v49, %v1098_v53 }
 0x1e5   : > { %v1103_v60 = vsel %vm1102_vm11, %v1999_v49, %v1099_v56 }
 0x1e6   : > { %v1108_v59 = vsel %vm1105_vm12, %v1107_v61, %v1103_v60 }
 0x1e7   : > { %v1110_v0 = vmul.f32 0.0, %v1108_v59 }
 0x244   : > { %v1114_v62 = vpop.permute.xlu0 %1113 }
 0x245   : > { %v1116_v63 = vmul.f32 %v1114_v62, %v1108_v59 }
 0x247   : > { %1118 = vrot.lane.b32.xlu1 %v1116_v63, %s2093_s24 }
 0x2b9   : > { %v1119_v1 = vpop.permute.xlu1 %1118 }
 0x2ba   : > { %v2504_v2 = vadd.f32 %v1119_v1, %v1110_v0 }
 0x2bc   : > { %2000 = vtanh.f32 %v2504_v2 }
 0x2c2   : > { %v2001_v6 = vpop.eup %2000 }
 0x2c3   : > { %1124 = vrot.lane.b32.xlu2 %v2001_v6, %s2095_s26 }
 0x31d   : > { %v1125_v7 = vpop.permute.xlu2 %1124 }
 0x31e   : > { %v2508_v8 = vmul.f32 %v1125_v7, %v1108_v59 }
 0x320   : > { %v1128_v10 = vpack.c.bf16 %v2508_v8, %v2508_v8 }
 0x322   : > { %1130 = vrot.lane.b32.xlu0 %v1128_v10, %s2093_s24  ;;  %v853_v10 = vld [vmem:[%s2333_s12 + $0x10] sm:$0xff] }
 0x394   : > { %v1131_v12 = vpop.permute.xlu0 %1130 }
 0x395   : > { %1837 = vmatmul.msk.bf16.vlgmr.msrb.gmra.mxu2 %vm939_vm8, %v1131_v12 }
 0x396   : > { %1373 = vmatpush.bf16.msrb.mxu2 %v2364_v40 }
 0x39a   : > { %1374 = vmatpush.bf16.msrb.mxu2 %v2430_v16 }
 0x418   : > { %v1144_v9 = vpop.f32.mrf.mxu2 }
 0x419   : > { %v1148_v18 = vadd.f32 %v1144_v9, %v1051_v36 }
 0x41b   : > { %2002 = vtanh.f32 %v1148_v18  ;;  %v1838_v38 = vmul.f32 -1.442695, %v1148_v18 }
 0x41c   : > { %2004 = vtanh.f32 %v2456_v29  ;;  %v854_v29 = vld [vmem:[%s2333_s12 + $0x18] sm:$0xff] }
 0x41d   : > { %2006 = vtanh.f32 %v2464_v46 }
 0x41e   : > { %2008 = vtanh.f32 %v2459_v37 }
 0x41f   : > { %2010 = vtanh.f32 %v671_v31 }
 0x420   : > { %v1146_v19 = vpop.f32.mrf.mxu2  ;;  %2012 = vpow2.f32 %v1838_v38 }
 0x421   : > { %v2003_v21 = vpop.eup %2002 }
 0x422   : > { %1171 = vrot.lane.b32.xlu1 %v2003_v21, %s2095_s26  ;;  %v2005_v22 = vpop.eup %2004 }
 0x423   : > { %v2007_v25 = vpop.eup %2006 }
 0x424   : > { %v1923_v30 = vpack.i.bf16 %v2007_v25, %v2005_v22  ;;  %v2009_v46 = vpop.eup %2008 }
 0x425   : > { %v2011_v33 = vpop.eup %2010 }
 0x426   : > { %v1939_v34 = vpack.i.bf16 %v2011_v33, %v2009_v46  ;;  %v2013_v39 = vpop.eup %2012 }
 0x427   : > { %v1152_v41 = vadd.f32 1.0, %v2013_v39 }
 0x429   : > { %2014 = vrcp.f32 %v1152_v41  ;;  %v1164_v37 = vand.u32 2147483648, %v1152_v41  ;;  %vm1158_vm14 = vweird.f32 %v1152_v41  ;;  %v1162_v44 = vand.u32 2147483647, %v1152_v41 }
 0x42a   : > { %1924 = vrot.lane.b32.xlu1 %v1923_v30, %s2094_s25 }
 0x42b   : > { %v1165_v47 = vor.u32 1.1754944e-38, %v1164_v37  ;;  %vm1163_vm0 = vcmp.eq.f32.partialorder %v1162_v44, 8.507059e+37 }
 0x42f   : > { %v2015_v55 = vpop.eup %2014 }
 0x430   : > { %v1154_v42 = vmul.f32 %v2015_v55, %v1152_v41  ;;  %vm1159_vm13 = vweird.f32 %v2015_v55 }
 0x431   : > { %vm1160_vm15 = vmor %vm1158_vm14, %vm1159_vm13 }
 0x432   : > { %869 = vperm.xlu1 %1912, %v854_v29   ;;  %v1155_v43 = vsub.f32 1.0, %v1154_v42 }
 0x434   : > { %v1156_v28 = vmul.f32 %v2015_v55, %v1155_v43 }
 0x436   : > { %v1157_v54 = vadd.f32 %v2015_v55, %v1156_v28 }
 0x438   : > { %v1161_v45 = vsel %vm1160_vm15, %v2015_v55, %v1157_v54 }
 0x439   : > { %v1166_v50 = vsel %vm1163_vm0, %v1165_v47, %v1161_v45 }
 0x43a   : > { %1940 = vrot.lane.b32.xlu1 %v1939_v34, %s2094_s25  ;;  %v1168_v56 = vmul.f32 %v1166_v50, %v2504_v2 }
 0x494   : > { %v1172_v49 = vpop.permute.xlu1 %1171 }
 0x495   : > { %v1174_v51 = vmul.f32 %v1172_v49, %v1166_v50 }
 0x497   : > { %1176 = vrot.lane.b32.xlu2 %v1174_v51, %s2093_s24 }
 0x49c   : > { %v1925_v53 = vpop.permute.xlu1 %1924 }
 0x49d   : > { %v1927_v59 = vunpack.i.h.bf16 %v1925_v53  ;;  %v1926_v63 = vunpack.i.l.bf16 %v1925_v53 }
 0x49f   : > { %1929 = vrot.lane.b32.xlu2 %v1923_v30, %s2095_s26  ;;  %v734_v6 = vmax.f32 %v2007_v25, %v1927_v59  ;;  %v733_v7 = vmax.f32 %v2005_v22, %v1926_v63 }
 0x4a4   : > { %v870_v60 = vpop.permute.xlu1 %869 }
 0x4a5   : > { %vm886_vm1 = vcmp.eq.s32.totalorder %v870_v60, %v2199_v23 }
 0x4a7   : > { %1935 = vrot.lane.b32.xlu2 %v1923_v30, %s2093_s24 }
 0x4ac   : > { %v1941_v36 = vpop.permute.xlu1 %1940 }
 0x4ad   : > { %v1943_v19 = vunpack.i.h.bf16 %v1941_v36  ;;  %v1942_v21 = vunpack.i.l.bf16 %v1941_v36 }
 0x4f1   : > { %v1177_v57 = vpop.permute.xlu2 %1176 }
 0x4f2   : > { %v2533_v58 = vadd.f32 %v1177_v57, %v1168_v56 }
 0x4f4   : > { %2016 = vtanh.f32 %v2533_v58 }
 0x4f9   : > { %v1930_v61 = vpop.permute.xlu2 %1929 }
 0x4fa   : > { %v2017_v62 = vpop.eup %2016  ;;  %v1932_v0 = vunpack.i.h.bf16 %v1930_v61  ;;  %v1931_v1 = vunpack.i.l.bf16 %v1930_v61 }
 0x4fb   : > { %1182 = vrot.lane.b32.xlu0 %v2017_v62, %s2095_s26 }
 0x4fc   : > { %v766_v5 = vmax.f32 %v734_v6, %v1932_v0  ;;  %v765_v2 = vmax.f32 %v733_v7, %v1931_v1 }
 0x501   : > { %v1936_v12 = vpop.permute.xlu2 %1935 }
 0x502   : > { %v1938_v14 = vunpack.i.h.bf16 %v1936_v12  ;;  %v1937_v15 = vunpack.i.l.bf16 %v1936_v12 }
 0x503   : > { %866 = vperm.xlu0 %1933, %v853_v10  }
 0x504   : > { %v797_v9 = vmax.f32 %v765_v2, %v1937_v15  ;;  %v798_v18 = vmax.f32 %v766_v5, %v1938_v14 }
 0x506   : > { %v805_v27 = vmax.f32 %v797_v9, %v2009_v46  ;;  %v806_v30 = vmax.f32 %v798_v18, %v2011_v33  ;;  %v1791_v46 = vsel %vm886_vm1, 1.0, %v2090_v48 }
 0x508   : > { %v845_v31 = vmax.f32 %v805_v27, %v1942_v21  ;;  %v846_v29 = vmax.f32 %v806_v30, %v1943_v19 }
 0x50a   : > { %v920_v34 = vpack.c.bf16 %v846_v29, %v845_v31 }
 0x50c   : > { %1805 = vmatmul.msk.bf16.gmra.mxu1 %vm939_vm8, %v920_v34 }
 0x56d   : > { %v1183_v22 = vpop.permute.xlu0 %1182 }
 0x56e   : > { %v2539_v25 = vmul.f32 %v1183_v22, %v1166_v50  ;;  %v856_v22 = vld [vmem:[%s2333_s12 + $0x28] sm:$0xff] }
 0x570   : > { %v1186_v38 = vpack.c.bf16 %v2539_v25, %v2539_v25 }
 0x572   : > { %1188 = vrot.lane.b32.xlu2 %v1186_v38, %s2093_s24 }
 0x575   : > { %v867_v39 = vpop.permute.xlu0 %866 }
 0x576   : > { %vm885_vm3 = vcmp.eq.s32.totalorder %v867_v39, %v2199_v23 }
 0x577   : > { %v1790_v33 = vsel %vm885_vm3, 1.0, %v2090_v48 }
 0x578   : > { %v908_v41 = vpack.c.bf16 %v1791_v46, %v1790_v33 }
 0x57a   : > { %1825 = vmatmul.msk.bf16.gmra.mxu3 %vm554_vm2, %v908_v41 }
 0x589   : > { %v966_v43 = vpop.f32.mrf.mxu1 }
 0x5cc   : > { %v1189_v55 = vpop.permute.xlu2 %1188 }
 0x5cd   : > { %1839 = vmatmul.msk.bf16.vlgmr.msra.gmra.mxu0 %vm939_vm8, %v1189_v55 }
 0x5ce   : > { %1431 = vmatpush.bf16.msra.mxu0 %v2364_v40 }
 0x5d2   : > { %1432 = vmatpush.bf16.msra.mxu0 %v2430_v16 }
 0x5fd   : > { %v1031_v42 = vpop.f32.mrf.mxu3 }
 0x5fe   : > { %v1032_v28 = vadd.f32 %v1031_v42, %v966_v43 }
 0x600   : > { %v1052_v54 = vadd.f32 %v2499_v24, %v1032_v28 }
 0x605   : > { %v1033_v36 = vpop.f32.mrf.mxu3 }
 0x64a   : > { %v1202_v37 = vpop.f32.mrf.mxu0 }
 0x64b   : > { %v1206_v44 = vadd.f32 %v1202_v37, %v1052_v54 }
 0x64d   : > { %2018 = vtanh.f32 %v1206_v44  ;;  %v1840_v49 = vmul.f32 -1.442695, %v1206_v44 }
 0x64f   : > { %2020 = vpow2.f32 %v1840_v49 }
 0x652   : > { %v1204_v45 = vpop.f32.mrf.mxu0 }
 0x653   : > { %v2019_v47 = vpop.eup %2018 }
 0x654   : > { %1229 = vrot.lane.b32.xlu0 %v2019_v47, %s2095_s26 }
 0x655   : > { %v2021_v50 = vpop.eup %2020 }
 0x656   : > { %v1210_v51 = vadd.f32 1.0, %v2021_v50 }
 0x658   : > { %2022 = vrcp.f32 %v1210_v51  ;;  %v1222_v60 = vand.u32 2147483648, %v1210_v51  ;;  %vm1216_vm5 = vweird.f32 %v1210_v51  ;;  %v1220_v61 = vand.u32 2147483647, %v1210_v51 }
 0x65a   : > { %v1223_v59 = vor.u32 1.1754944e-38, %v1222_v60  ;;  %vm1221_vm7 = vcmp.eq.f32.partialorder %v1220_v61, 8.507059e+37 }
 0x65e   : > { %v2023_v40 = vpop.eup %2022 }
 0x65f   : > { %v1212_v53 = vmul.f32 %v2023_v40, %v1210_v51  ;;  %vm1217_vm4 = vweird.f32 %v2023_v40 }
 0x660   : > { %vm1218_vm6 = vmor %vm1216_vm5, %vm1217_vm4 }
 0x661   : > { %v1213_v16 = vsub.f32 1.0, %v1212_v53 }
 0x663   : > { %v1214_v56 = vmul.f32 %v2023_v40, %v1213_v16 }
 0x665   : > { %v1215_v57 = vadd.f32 %v2023_v40, %v1214_v56 }
 0x667   : > { %v1219_v62 = vsel %vm1218_vm6, %v2023_v40, %v1215_v57  ;;  %v855_v40 = vld [vmem:[%s2333_s12 + $0x20] sm:$0xff] }
 0x668   : > { %v1224_v0 = vsel %vm1221_vm7, %v1223_v59, %v1219_v62 }
 0x669   : > { %v1226_v6 = vmul.f32 %v1224_v0, %v2533_v58  ;;  %v968_v58 = vpop.f32.mrf.mxu1 }
 0x66a   : > { %v1034_v9 = vadd.f32 %v1033_v36, %v968_v58 }
 0x66c   : > { %v1053_v18 = vadd.f32 %v2499_v24, %v1034_v9 }
 0x6c6   : > { %v1230_v63 = vpop.permute.xlu0 %1229 }
 0x6c7   : > { %v1232_v1 = vmul.f32 %v1230_v63, %v1224_v0 }
 0x6c9   : > { %1234 = vrot.lane.b32.xlu1 %v1232_v1, %s2093_s24 }
 0x73b   : > { %v1235_v7 = vpop.permute.xlu1 %1234 }
 0x73c   : > { %v1237_v10 = vadd.f32 %v1235_v7, %v1226_v6 }
 0x73e   : > { %2024 = vtanh.f32 %v1237_v10 }
 0x744   : > { %v2025_v12 = vpop.eup %2024 }
 0x745   : > { %1240 = vrot.lane.b32.xlu2 %v2025_v12, %s2095_s26 }
 0x79f   : > { %v1241_v5 = vpop.permute.xlu2 %1240 }
 0x7a0   : > { %v2557_v2 = vmul.f32 %v1241_v5, %v1224_v0 }
 0x7a2   : > { %v1244_v14 = vpack.c.bf16 %v2557_v2, %v2557_v2 }
 0x7a4   : > { %1246 = vrot.lane.b32.xlu0 %v1244_v14, %s2093_s24 }
 0x816   : > { %v1247_v15 = vpop.permute.xlu0 %1246 }
 0x817   : > { %1841 = vmatmul.msk.bf16.vlgmr.msra.gmra.mxu2 %vm939_vm8, %v1247_v15 }
 0x89a   : > { %v1260_v19 = vpop.f32.mrf.mxu2 }
 0x89b   : > { %v1264_v21 = vadd.f32 %v1260_v19, %v1053_v18 }
 0x89d   : > { %2026 = vtanh.f32 %v1264_v21  ;;  %v1842_v38 = vmul.f32 -1.442695, %v1264_v21 }
 0x89e   : > { %2028 = vtanh.f32 %v2473_v3 }
 0x89f   : > { %2030 = vtanh.f32 %v2480_v13 }
 0x8a0   : > { %2032 = vpow2.f32 %v1842_v38 }
 0x8a2   : > { %v1262_v27 = vpop.f32.mrf.mxu2 }
 0x8a3   : > { %v2027_v30 = vpop.eup %2026 }
 0x8a4   : > { %1287 = vrot.lane.b32.xlu1 %v2027_v30, %s2095_s26  ;;  %v2029_v31 = vpop.eup %2028 }
 0x8a5   : > { %v2031_v29 = vpop.eup %2030 }
 0x8a6   : > { %v1944_v34 = vpack.i.bf16 %v2031_v29, %v2029_v31  ;;  %v2033_v39 = vpop.eup %2032 }
 0x8a7   : > { %v1268_v46 = vadd.f32 1.0, %v2033_v39 }
 0x8a9   : > { %2034 = vrcp.f32 %v1268_v46  ;;  %v1280_v42 = vand.u32 2147483648, %v1268_v46  ;;  %vm1274_vm10 = vweird.f32 %v1268_v46  ;;  %v1278_v43 = vand.u32 2147483647, %v1268_v46 }
 0x8ab   : > { %v1281_v54 = vor.u32 1.1754944e-38, %v1280_v42  ;;  %vm1279_vm12 = vcmp.eq.f32.partialorder %v1278_v43, 8.507059e+37 }
 0x8ac   : > { %1945 = vrot.lane.b32.xlu1 %v1944_v34, %s2094_s25 }
 0x8af   : > { %v2035_v33 = vpop.eup %2034 }
 0x8b0   : > { %v1270_v3 = vmul.f32 %v2035_v33, %v1268_v46  ;;  %vm1275_vm9 = vweird.f32 %v2035_v33 }
 0x8b1   : > { %vm1276_vm11 = vmor %vm1274_vm10, %vm1275_vm9 }
 0x8b2   : > { %v1271_v41 = vsub.f32 1.0, %v1270_v3 }
 0x8b4   : > { %875 = vperm.xlu1 %1912, %v856_v22   ;;  %v1272_v13 = vmul.f32 %v2035_v33, %v1271_v41 }
 0x8b6   : > { %v1273_v55 = vadd.f32 %v2035_v33, %v1272_v13 }
 0x8b8   : > { %v1277_v28 = vsel %vm1276_vm11, %v2035_v33, %v1273_v55 }
 0x8b9   : > { %v1282_v44 = vsel %vm1279_vm12, %v1281_v54, %v1277_v28 }
 0x8ba   : > { %v1284_v47 = vmul.f32 %v1282_v44, %v1237_v10 }
 0x916   : > { %v1288_v37 = vpop.permute.xlu1 %1287 }
 0x917   : > { %v1290_v45 = vmul.f32 %v1288_v37, %v1282_v44 }
 0x919   : > { %1292 = vrot.lane.b32.xlu2 %v1290_v45, %s2093_s24 }
 0x91e   : > { %v1946_v57 = vpop.permute.xlu1 %1945 }
 0x91f   : > { %v1948_v63 = vunpack.i.h.bf16 %v1946_v57 }
 0x921   : > { %1950 = vrot.lane.b32.xlu2 %v1944_v34, %s2095_s26  ;;  %v736_v7 = vmax.f32 %v2031_v29, %v1948_v63 }
 0x926   : > { %v876_v0 = vpop.permute.xlu1 %875 }
 0x927   : > { %vm888_vm13 = vcmp.eq.s32.totalorder %v876_v0, %v2199_v23 }
 0x928   : > { %v1793_v15 = vsel %vm888_vm13, 1.0, %v2090_v48 }
 0x929   : > { %1955 = vrot.lane.b32.xlu2 %v1944_v34, %s2093_s24 }
 0x973   : > { %v1293_v49 = vpop.permute.xlu2 %1292 }
 0x974   : > { %v2572_v50 = vadd.f32 %v1293_v49, %v1284_v47 }
 0x976   : > { %2036 = vtanh.f32 %v2572_v50 }
 0x977   : > { %2038 = vtanh.f32 %v2477_v11  ;;  %v1947_v11 = vunpack.i.l.bf16 %v1946_v57 }
 0x978   : > { %2040 = vtanh.f32 %v2483_v17 }
 0x979   : > { %v735_v12 = vmax.f32 %v2029_v31, %v1947_v11 }
 0x97b   : > { %v1951_v60 = vpop.permute.xlu2 %1950 }
 0x97c   : > { %v2037_v51 = vpop.eup %2036  ;;  %v1953_v1 = vunpack.i.h.bf16 %v1951_v60  ;;  %v1952_v6 = vunpack.i.l.bf16 %v1951_v60 }
 0x97d   : > { %1298 = vrot.lane.b32.xlu0 %v2037_v51, %s2095_s26  ;;  %v2039_v53 = vpop.eup %2038 }
 0x97e   : > { %v2041_v16 = vpop.eup %2040  ;;  %v768_v58 = vmax.f32 %v736_v7, %v1953_v1  ;;  %v767_v9 = vmax.f32 %v735_v12, %v1952_v6 }
 0x97f   : > { %v1959_v56 = vpack.i.bf16 %v2041_v16, %v2039_v53 }
 0x983   : > { %v1956_v17 = vpop.permute.xlu2 %1955 }
 0x984   : > { %v1958_v5 = vunpack.i.h.bf16 %v1956_v17  ;;  %v1957_v14 = vunpack.i.l.bf16 %v1956_v17 }
 0x985   : > { %872 = vperm.xlu0 %1933, %v855_v40  }
 0x986   : > { %v799_v19 = vmax.f32 %v767_v9, %v1957_v14  ;;  %v800_v21 = vmax.f32 %v768_v58, %v1958_v5 }
 0x988   : > { %v807_v30 = vmax.f32 %v799_v19, %v2039_v53  ;;  %v808_v29 = vmax.f32 %v800_v21, %v2041_v16 }
 0x98d   : > { %1960 = vrot.lane.b32.xlu0 %v1959_v56, %s2094_s25 }
 0x9ef   : > { %v1299_v61 = vpop.permute.xlu0 %1298 }
 0x9f0   : > { %v2580_v62 = vmul.f32 %v1299_v61, %v1282_v44 }
 0x9f2   : > { %v1302_v59 = vpack.c.bf16 %v2580_v62, %v2580_v62 }
 0x9f4   : > { %1304 = vrot.lane.b32.xlu1 %v1302_v59, %s2093_s24 }
 0x9f7   : > { %v873_v10 = vpop.permute.xlu0 %872 }
 0x9f8   : > { %vm887_vm14 = vcmp.eq.s32.totalorder %v873_v10, %v2199_v23 }
 0x9f9   : > { %v1792_v36 = vsel %vm887_vm14, 1.0, %v2090_v48 }
 0x9fa   : > { %v909_v18 = vpack.c.bf16 %v1793_v15, %v1792_v36 }
 0x9fc   : > { %1826 = vmatmul.msk.bf16.gmra.mxu3 %vm554_vm2, %v909_v18 }
 0x9ff   : > { %v1961_v27 = vpop.permute.xlu0 %1960 }
 0xa00   : > { %v1963_v34 = vunpack.i.h.bf16 %v1961_v27  ;;  %v1962_v31 = vunpack.i.l.bf16 %v1961_v27  ;;  %v858_v27 = vld [vmem:[%s2333_s12 + $0x38] sm:$0xff] }
 0xa02   : > { %v848_v22 = vmax.f32 %v808_v29, %v1963_v34  ;;  %v847_v38 = vmax.f32 %v807_v30, %v1962_v31 }
 0xa04   : > { %v921_v39 = vpack.c.bf16 %v848_v22, %v847_v38 }
 0xa06   : > { %1806 = vmatmul.msk.bf16.gmra.mxu1 %vm939_vm8, %v921_v39 }
 0xa66   : > { %v1305_v46 = vpop.permute.xlu1 %1304 }
 0xa67   : > { %1843 = vmatmul.msk.bf16.vlgmr.msrb.gmra.mxu0 %vm939_vm8, %v1305_v46 }
 0xa7f   : > { %v1036_v3 = vpop.f32.mrf.mxu3 }
 0xa83   : > { %v971_v33 = vpop.f32.mrf.mxu1 }
 0xa84   : > { %v1037_v41 = vadd.f32 %v1036_v3, %v971_v33 }
 0xa86   : > { %v1054_v13 = vadd.f32 %v2499_v24, %v1037_v41 }
 0xa8b   : > { %v973_v12 = vpop.f32.mrf.mxu1 }
 0xae4   : > { %v1318_v55 = vpop.f32.mrf.mxu0 }
 0xae5   : > { %v1322_v42 = vadd.f32 %v1318_v55, %v1054_v13 }
 0xae7   : > { %2042 = vtanh.f32 %v1322_v42  ;;  %v1844_v54 = vmul.f32 -1.442695, %v1322_v42 }
 0xae9   : > { %2044 = vpow2.f32 %v1844_v54  ;;  %v652_v54 = vadd.f32 %v2516_v4, %v2379_v52 }
 0xaec   : > { %v1320_v43 = vpop.f32.mrf.mxu0 }
 0xaed   : > { %v2043_v28 = vpop.eup %2042 }
 0xaee   : > { %1345 = vrot.lane.b32.xlu2 %v2043_v28, %s2095_s26 }
 0xaef   : > { %v2045_v37 = vpop.eup %2044 }
 0xaf0   : > { %v1326_v44 = vadd.f32 1.0, %v2045_v37 }
 0xaf2   : > { %2046 = vrcp.f32 %v1326_v44  ;;  %v1338_v53 = vand.u32 2147483648, %v1326_v44  ;;  %vm1332_vm0 = vweird.f32 %v1326_v44  ;;  %v1336_v16 = vand.u32 2147483647, %v1326_v44 }
 0xaf4   : > { %v1339_v57 = vor.u32 1.1754944e-38, %v1338_v53  ;;  %vm1337_vm3 = vcmp.eq.f32.partialorder %v1336_v16, 8.507059e+37 }
 0xaf8   : > { %v2047_v45 = vpop.eup %2046 }
 0xaf9   : > { %v1328_v47 = vmul.f32 %v2047_v45, %v1326_v44  ;;  %vm1333_vm15 = vweird.f32 %v2047_v45  ;;  %v681_v44 = vadd.f32 %v2494_v35, %v652_v54 }
 0xafa   : > { %vm1334_vm1 = vmor %vm1332_vm0, %vm1333_vm15 }
 0xafb   : > { %v1329_v49 = vsub.f32 1.0, %v1328_v47 }
 0xafd   : > { %v1330_v51 = vmul.f32 %v2047_v45, %v1329_v49 }
 0xaff   : > { %v1331_v40 = vadd.f32 %v2047_v45, %v1330_v51 }
 0xb01   : > { %v1335_v56 = vsel %vm1334_vm1, %v2047_v45, %v1331_v40  ;;  %v857_v45 = vld [vmem:[%s2333_s12 + $0x30] sm:$0xff] }
 0xb02   : > { %v1340_v61 = vsel %vm1337_vm3, %v1339_v57, %v1335_v56 }
 0xb03   : > { %v1342_v63 = vmul.f32 %v1340_v61, %v2572_v50  ;;  %v1038_v50 = vpop.f32.mrf.mxu3 }
 0xb04   : > { %v1039_v5 = vadd.f32 %v1038_v50, %v973_v12 }
 0xb06   : > { %v1055_v14 = vadd.f32 %v2499_v24, %v1039_v5 }
 0xb48   : > { %v1346_v60 = vpop.permute.xlu2 %1345 }
 0xb49   : > { %v1348_v59 = vmul.f32 %v1346_v60, %v1340_v61 }
 0xb4b   : > { %1350 = vrot.lane.b32.xlu0 %v1348_v59, %s2093_s24 }
 0xbbd   : > { %v1351_v0 = vpop.permute.xlu0 %1350 }
 0xbbe   : > { %v1353_v11 = vadd.f32 %v1351_v0, %v1342_v63 }
 0xbc0   : > { %2048 = vtanh.f32 %v1353_v11 }
 0xbc6   : > { %v2049_v17 = vpop.eup %2048 }
 0xbc7   : > { %1356 = vrot.lane.b32.xlu1 %v2049_v17, %s2095_s26 }
 0xc39   : > { %v1357_v1 = vpop.permute.xlu1 %1356 }
 0xc3a   : > { %v2597_v6 = vmul.f32 %v1357_v1, %v1340_v61 }
 0xc3c   : > { %v1360_v7 = vpack.c.bf16 %v2597_v6, %v2597_v6 }
 0xc3e   : > { %1362 = vrot.lane.b32.xlu2 %v1360_v7, %s2093_s24 }
 0xc98   : > { %v1363_v10 = vpop.permute.xlu2 %1362 }
 0xc99   : > { %1845 = vmatmul.msk.bf16.vlgmr.msrb.gmra.mxu2 %vm939_vm8, %v1363_v10 }
 0xd1c   : > { %v1376_v15 = vpop.f32.mrf.mxu2 }
 0xd1d   : > { %v1380_v36 = vadd.f32 %v1376_v15, %v1055_v14 }
 0xd1f   : > { %2050 = vtanh.f32 %v1380_v36  ;;  %v1846_v30 = vmul.f32 -1.442695, %v1380_v36 }
 0xd20   : > { %2052 = vtanh.f32 %v2486_v20 }
 0xd21   : > { %2054 = vtanh.f32 %v2492_v32 }
 0xd22   : > { %2056 = vpow2.f32 %v1846_v30 }
 0xd24   : > { %v1378_v58 = vpop.f32.mrf.mxu2 }
 0xd25   : > { %v2051_v9 = vpop.eup %2050 }
 0xd26   : > { %1403 = vrot.lane.b32.xlu0 %v2051_v9, %s2095_s26  ;;  %v2053_v18 = vpop.eup %2052 }
 0xd27   : > { %v2055_v19 = vpop.eup %2054 }
 0xd28   : > { %v1964_v21 = vpack.i.bf16 %v2055_v19, %v2053_v18  ;;  %v2057_v29 = vpop.eup %2056 }
 0xd29   : > { %v1384_v34 = vadd.f32 1.0, %v2057_v29 }
 0xd2b   : > { %2058 = vrcp.f32 %v1384_v34  ;;  %v1396_v39 = vand.u32 2147483648, %v1384_v34  ;;  %vm1390_vm5 = vweird.f32 %v1384_v34  ;;  %v1394_v46 = vand.u32 2147483647, %v1384_v34 }
 0xd2d   : > { %v1397_v3 = vor.u32 1.1754944e-38, %v1396_v39  ;;  %vm1395_vm7 = vcmp.eq.f32.partialorder %v1394_v46, 8.507059e+37 }
 0xd2e   : > { %1965 = vrot.lane.b32.xlu0 %v1964_v21, %s2094_s25 }
 0xd31   : > { %v2059_v31 = vpop.eup %2058 }
 0xd32   : > { %v1386_v20 = vmul.f32 %v2059_v31, %v1384_v34  ;;  %vm1391_vm4 = vweird.f32 %v2059_v31 }
 0xd33   : > { %vm1392_vm6 = vmor %vm1390_vm5, %vm1391_vm4 }
 0xd34   : > { %v1387_v22 = vsub.f32 1.0, %v1386_v20 }
 0xd36   : > { %881 = vperm.xlu0 %1933, %v858_v27   ;;  %v1388_v32 = vmul.f32 %v2059_v31, %v1387_v22 }
 0xd38   : > { %v1389_v38 = vadd.f32 %v2059_v31, %v1388_v32 }
 0xd3a   : > { %v1393_v33 = vsel %vm1392_vm6, %v2059_v31, %v1389_v38 }
 0xd3b   : > { %v1398_v13 = vsel %vm1395_vm7, %v1397_v3, %v1393_v33 }
 0xd3c   : > { %v1400_v42 = vmul.f32 %v1398_v13, %v1353_v11 }
 0xd98   : > { %v1404_v41 = vpop.permute.xlu0 %1403 }
 0xd99   : > { %v1406_v55 = vmul.f32 %v1404_v41, %v1398_v13 }
 0xd9b   : > { %1408 = vrot.lane.b32.xlu1 %v1406_v55, %s2093_s24 }
 0xda0   : > { %v1966_v40 = vpop.permute.xlu0 %1965 }
 0xda1   : > { %v1968_v4 = vunpack.i.h.bf16 %v1966_v40  ;;  %v1967_v57 = vunpack.i.l.bf16 %v1966_v40 }
 0xda3   : > { %1970 = vrot.lane.b32.xlu1 %v1964_v21, %s2095_s26  ;;  %v738_v59 = vmax.f32 %v2055_v19, %v1968_v4  ;;  %v737_v0 = vmax.f32 %v2053_v18, %v1967_v57 }
 0xda8   : > { %v882_v35 = vpop.permute.xlu0 %881 }
 0xda9   : > { %vm890_vm9 = vcmp.eq.s32.totalorder %v882_v35, %v2199_v23 }
 0xdaa   : > { %v1795_v1 = vsel %vm890_vm9, 1.0, %v2090_v48 }
 0xdab   : > { %1976 = vrot.lane.b32.xlu1 %v1964_v21, %s2093_s24 }
 0xe0d   : > { %v1409_v43 = vpop.permute.xlu1 %1408 }
 0xe0e   : > { %v2612_v28 = vadd.f32 %v1409_v43, %v1400_v42 }
 0xe10   : > { %2060 = vtanh.f32 %v2612_v28 }
 0xe11   : > { %2062 = vtanh.f32 %v2489_v26 }
 0xe12   : > { %2064 = vtanh.f32 %v681_v44 }
 0xe15   : > { %v1971_v53 = vpop.permute.xlu1 %1970 }
 0xe16   : > { %v2061_v37 = vpop.eup %2060  ;;  %v1973_v60 = vunpack.i.h.bf16 %v1971_v53  ;;  %v1972_v61 = vunpack.i.l.bf16 %v1971_v53 }
 0xe17   : > { %1414 = vrot.lane.b32.xlu2 %v2061_v37, %s2095_s26  ;;  %v2063_v47 = vpop.eup %2062 }
 0xe18   : > { %v2065_v49 = vpop.eup %2064  ;;  %v770_v10 = vmax.f32 %v738_v59, %v1973_v60  ;;  %v769_v12 = vmax.f32 %v737_v0, %v1972_v61 }
 0xe19   : > { %v1980_v51 = vpack.i.bf16 %v2065_v49, %v2063_v47 }
 0xe1d   : > { %v1977_v26 = vpop.permute.xlu1 %1976 }
 0xe1e   : > { %v1979_v11 = vunpack.i.h.bf16 %v1977_v26  ;;  %v1978_v17 = vunpack.i.l.bf16 %v1977_v26 }
 0xe1f   : > { %878 = vperm.xlu2 %1974, %v857_v45  }
 0xe20   : > { %v801_v5 = vmax.f32 %v769_v12, %v1978_v17  ;;  %v802_v14 = vmax.f32 %v770_v10, %v1979_v11 }
 0xe22   : > { %v809_v36 = vmax.f32 %v801_v5, %v2063_v47  ;;  %v810_v58 = vmax.f32 %v802_v14, %v2065_v49 }
 0xe27   : > { %1981 = vrot.lane.b32.xlu2 %v1980_v51, %s2094_s25 }
 0xe71   : > { %v1415_v16 = vpop.permute.xlu2 %1414 }
 0xe72   : > { %v2622_v56 = vmul.f32 %v1415_v16, %v1398_v13 }
 0xe74   : > { %v1418_v52 = vpack.c.bf16 %v2622_v56, %v2622_v56 }
 0xe76   : > { %1420 = vrot.lane.b32.xlu0 %v1418_v52, %s2093_s24 }
 0xe79   : > { %v879_v63 = vpop.permute.xlu2 %878 }
 0xe7a   : > { %vm889_vm10 = vcmp.eq.s32.totalorder %v879_v63, %v2199_v23 }
 0xe7b   : > { %v1794_v7 = vsel %vm889_vm10, 1.0, %v2090_v48 }
 0xe7c   : > { %v910_v50 = vpack.c.bf16 %v1795_v1, %v1794_v7 }
 0xe7e   : > { %1827 = vmatmul.msk.bf16.gmra.mxu3 %vm554_vm2, %v910_v50 }
 0xe81   : > { %v1982_v15 = vpop.permute.xlu2 %1981 }
 0xe82   : > { %v1984_v9 = vunpack.i.h.bf16 %v1982_v15  ;;  %v1983_v18 = vunpack.i.l.bf16 %v1982_v15 }
 0xe84   : > { %v850_v19 = vmax.f32 %v810_v58, %v1984_v9  ;;  %v849_v21 = vmax.f32 %v809_v36, %v1983_v18 }
 0xe86   : > { %v922_v27 = vpack.c.bf16 %v850_v19, %v849_v21 }
 0xe88   : > { %1807 = vmatmul.msk.bf16.gmra.mxu1 %vm939_vm8, %v922_v27 }
 0xee8   : > { %v1421_v23 = vpop.permute.xlu0 %1420 }
 0xee9   : > { %1847 = vmatmul.msk.bf16.vlgmr.msra.gmra.mxu0 %vm939_vm8, %v1421_v23 }
 0xf01   : > { %v1041_v30 = vpop.f32.mrf.mxu3 }
 0xf05   : > { %v976_v48 = vpop.f32.mrf.mxu1 }
 0xf06   : > { %v1042_v29 = vadd.f32 %v1041_v30, %v976_v48 }
 0xf08   : > { %v1056_v34 = vadd.f32 %v2499_v24, %v1042_v29 }
 0xf09   : > { %v1043_v26 = vpop.f32.mrf.mxu3 }
 0xf0d   : > { %v978_v57 = vpop.f32.mrf.mxu1 }
 0xf0e   : > { %v1044_v60 = vadd.f32 %v1043_v26, %v978_v57 }
 0xf10   : > { %v1057_v61 = vadd.f32 %v2499_v24, %v1044_v60 }
 0xf66   : > { %v1434_v31 = vpop.f32.mrf.mxu0 }
 0xf67   : > { %v1438_v20 = vadd.f32 %v1434_v31, %v1056_v34 }
 0xf69   : > { %2066 = vtanh.f32 %v1438_v20  ;;  %v1848_v38 = vmul.f32 -1.442695, %v1438_v20 }
 0xf6b   : > { %2068 = vpow2.f32 %v1848_v38 }
 0xf6e   : > { %v1436_v22 = vpop.f32.mrf.mxu0 }
 0xf6f   : > { %v2067_v32 = vpop.eup %2066 }
 0xf70   : > { %1461 = vrot.lane.b32.xlu1 %v2067_v32, %s2095_s26 }
 0xf71   : > { %v2069_v39 = vpop.eup %2068 }
 0xf72   : > { %v1442_v46 = vadd.f32 1.0, %v2069_v39 }
 0xf74   : > { %2070 = vrcp.f32 %v1442_v46  ;;  %v1454_v42 = vand.u32 2147483648, %v1442_v46  ;;  %vm1448_vm11 = vweird.f32 %v1442_v46  ;;  %v1452_v43 = vand.u32 2147483647, %v1442_v46 }
 0xf76   : > { %v1455_v37 = vor.u32 1.1754944e-38, %v1454_v42  ;;  %vm1453_vm13 = vcmp.eq.f32.partialorder %v1452_v43, 8.507059e+37 }
 0xf7a   : > { %v2071_v33 = vpop.eup %2070 }
 0xf7b   : > { %v1444_v3 = vmul.f32 %v2071_v33, %v1442_v46  ;;  %vm1449_vm2 = vweird.f32 %v2071_v33 }
 0xf7c   : > { %vm1450_vm12 = vmor %vm1448_vm11, %vm1449_vm2 }
 0xf7d   : > { %v1445_v41 = vsub.f32 1.0, %v1444_v3 }
 0xf7f   : > { %v1446_v13 = vmul.f32 %v2071_v33, %v1445_v41 }
 0xf81   : > { %v1447_v55 = vadd.f32 %v2071_v33, %v1446_v13 }
 0xf83   : > { %v1451_v54 = vsel %vm1450_vm12, %v2071_v33, %v1447_v55 }
 0xf84   : > { %v1456_v45 = vsel %vm1453_vm13, %v1455_v37, %v1451_v54 }
 0xf85   : > { %v1458_v49 = vmul.f32 %v1456_v45, %v2612_v28 }
 0xfe2   : > { %v1462_v44 = vpop.permute.xlu1 %1461 }
 0xfe3   : > { %v1464_v47 = vmul.f32 %v1462_v44, %v1456_v45 }
 0xfe5   : > { %1466 = vrot.lane.b32.xlu2 %v1464_v47, %s2093_s24 }
0x103f   : > { %v1467_v51 = vpop.permute.xlu2 %1466 }
0x1040   : > { %v1469_v40 = vadd.f32 %v1467_v51, %v1458_v49 }
0x1042   : > { %2072 = vtanh.f32 %v1469_v40 }
0x1048   : > { %v2073_v53 = vpop.eup %2072 }
0x1049   : > { %1472 = vrot.lane.b32.xlu0 %v2073_v53, %s2095_s26 }
0x10bb   : > { %v1473_v16 = vpop.permute.xlu0 %1472 }
0x10bc   : > { %v1475_v52 = vmul.f32 %v1473_v16, %v1456_v45 }
0x10be   : > { %v1476_v4 = vpack.c.bf16 %v1475_v52, %v1475_v52 }
0x10c0   : > { %1478 = vrot.lane.b32.xlu1 %v1476_v4, %s2093_s24 }
0x1132   : > { %v1479_v35 = vpop.permute.xlu1 %1478 }
0x1133   : > { %1849 = vmatmul.msk.bf16.vlgmr.msra.gmra.mxu1 %vm939_vm8, %v1479_v35 }
0x11b0   : > { %v1492_v28 = vpop.f32.mrf.mxu1 }
0x11b1   : > { %v1496_v59 = vadd.f32 %v1492_v28, %v1057_v61 }
0x11b3   : > { %2074 = vtanh.f32 %v1496_v59  ;;  %v1850_v11 = vmul.f32 -1.442695, %v1496_v59 }
0x11b5   : > { %2076 = vpow2.f32 %v1850_v11 }
0x11b8   : > { %v1494_v63 = vpop.f32.mrf.mxu1 }
0x11b9   : > { %v2075_v0 = vpop.eup %2074 }
0x11ba   : > { %1519 = vrot.lane.b32.xlu2 %v2075_v0, %s2095_s26 }
0x11bb   : > { %v2077_v17 = vpop.eup %2076 }
0x11bc   : > { %v1500_v1 = vadd.f32 1.0, %v2077_v17 }
0x11be   : > { %2078 = vrcp.f32 %v1500_v1  ;;  %v1512_v5 = vand.u32 2147483648, %v1500_v1  ;;  %vm1506_vm15 = vweird.f32 %v1500_v1 }
0x11c2   : > { %1542 = vrot.lane.b32.xlu2 %v2508_v8, %s2093_s24  ;;  %v1510_v8 = vand.u32 2147483647, %v1500_v1 }
0x11c4   : > { %v2079_v24 = vpop.eup %2078  ;;  %vm1511_vm1 = vcmp.eq.f32.partialorder %v1510_v8, 8.507059e+37 }
0x11c5   : > { %v1502_v7 = vmul.f32 %v2079_v24, %v1500_v1  ;;  %vm1507_vm14 = vweird.f32 %v2079_v24 }
0x11c6   : > { %vm1508_vm0 = vmor %vm1506_vm15, %vm1507_vm14 }
0x11c7   : > { %v1503_v10 = vsub.f32 1.0, %v1502_v7 }
0x11c9   : > { %v1504_v12 = vmul.f32 %v2079_v24, %v1503_v10 }
0x11ca   : > { %1548 = vrot.lane.b32.xlu2 %v2580_v62, %s2093_s24  ;;  %v1513_v62 = vor.u32 1.1754944e-38, %v1512_v5 }
0x11cb   : > { %v1505_v50 = vadd.f32 %v2079_v24, %v1504_v12 }
0x11cd   : > { %v1509_v14 = vsel %vm1508_vm0, %v2079_v24, %v1505_v50 }
0x11ce   : > { %v1514_v36 = vsel %vm1511_vm1, %v1513_v62, %v1509_v14 }
0x11cf   : > { %v1516_v21 = vmul.f32 %v1514_v36, %v1469_v40 }
0x11d2   : > { %1554 = vrot.lane.b32.xlu2 %v1475_v52, %s2093_s24 }
0x1214   : > { %v1520_v15 = vpop.permute.xlu2 %1519 }
0x1215   : > { %v1522_v58 = vmul.f32 %v1520_v15, %v1514_v36 }
0x1217   : > { %1524 = vrot.lane.b32.xlu0 %v1522_v58, %s2093_s24 }
0x121c   : > { %v1543_v9 = vpop.permute.xlu2 %1542 }
0x121d   : > { %1566 = vst.msk [vmem:[%s325_s20] sm:$0xff] %vm939_vm8, %v1543_v9 }
0x121f   : > { %1544 = vrot.lane.b32.xlu0 %v2539_v25, %s2093_s24 }
0x1224   : > { %v1549_v18 = vpop.permute.xlu2 %1548 }
0x1225   : > { %1569 = vst.msk [vmem:[%s325_s20 + $0x18] sm:$0xff] %vm939_vm8, %v1549_v18 }
0x1227   : > { %1550 = vrot.lane.b32.xlu0 %v2597_v6, %s2093_s24 }
0x122c   : > { %v1555_v19 = vpop.permute.xlu2 %1554 }
0x122d   : > { %1572 = vst.msk [vmem:[%s325_s20 + $0x30] sm:$0xff] %vm939_vm8, %v1555_v19 }
0x1289   : > { %v1525_v27 = vpop.permute.xlu0 %1524 }
0x128a   : > { %v1527_v23 = vadd.f32 %v1525_v27, %v1516_v21 }
0x128c   : > { %2080 = vtanh.f32 %v1527_v23 }
0x1291   : > { %v1545_v48 = vpop.permute.xlu0 %1544 }
0x1292   : > { %v2081_v30 = vpop.eup %2080  ;;  %1567 = vst.msk [vmem:[%s325_s20 + $0x8] sm:$0xff] %vm939_vm8, %v1545_v48 }
0x1293   : > { %1530 = vrot.lane.b32.xlu1 %v2081_v30, %s2095_s26 }
0x1299   : > { %v1551_v25 = vpop.permute.xlu0 %1550 }
0x129a   : > { %1570 = vst.msk [vmem:[%s325_s20 + $0x20] sm:$0xff] %vm939_vm8, %v1551_v25 }
0x129b   : > { %1546 = vrot.lane.b32.xlu1 %v2557_v2, %s2093_s24 }
0x12a3   : > { %1552 = vrot.lane.b32.xlu1 %v2622_v56, %s2093_s24 }
0x1305   : > { %v1531_v6 = vpop.permute.xlu1 %1530 }
0x1306   : > { %v1533_v29 = vmul.f32 %v1531_v6, %v1514_v36 }
0x1308   : > { %1556 = vrot.lane.b32.xlu0 %v1533_v29, %s2093_s24 }
0x130d   : > { %v1547_v34 = vpop.permute.xlu1 %1546 }
0x130e   : > { %1568 = vst.msk [vmem:[%s325_s20 + $0x10] sm:$0xff] %vm939_vm8, %v1547_v34 }
0x1315   : > { %v1553_v31 = vpop.permute.xlu1 %1552 }
0x1316   : > { %1571 = vst.msk [vmem:[%s325_s20 + $0x28] sm:$0xff] %vm939_vm8, %v1553_v31 }
0x137a   : > { %v1557_v20 = vpop.permute.xlu0 %1556 }
0x137b   : > { %1573 = vst.msk [vmem:[%s325_s20 + $0x38] sm:$0xff] %vm939_vm8, %v1557_v20 }
0x137c PF: > { %s18_s27 = sadd.s32 1, %s2088_s27  }
0x137d   : > { %p15_p4 = scmp.ge.s32.totalorder %s18_s27, 4  }
0x137f   :  { %17 = sbr.rel (!%p15_p4) target bundleno = 1 (0x1), region = 85 }

</bundles_post_ra>
